<compile_context>
chip_gen: v7x
topology: tpu7x:2x2x1
jax: 0.10.0
libtpu: 0.0.40
codegen_flags: <defaults>
</compile_context>

<pallas_src>
import functools

import jax
import jax.numpy as jnp
from jax.experimental import pallas as pl
from jax.experimental.pallas import tpu as pltpu


# ---------------------------------------------------------------------------
# Fused DETR kernel.  One grid step processes `nb` batch elements; the
# language path runs with nb*Lp rows folded into the matmul M dimension.
#
# Packed operand layout (see pack_params):
#   wdd    (n_tr+5, D, D) bf16 : [dec_0..dec_{n-1}, tr_img^T, text_sim,
#                                 visual_sim^T, bbox_w1, bbox_w2]
#   wkd    (Ep+Cin, D)    bf16 : [query_proj (Ep rows, zero-padded K) ;
#                                 input_proj row-form (Cin rows, pooled path)]
#   bias_d (n_tr+5, 1, D) f32  : [dec_b_0..dec_b_{n-1}, b_q, b_txt, b_bb1,
#                                 b_bb2, b_in(row)]
#   bias_c (3, D, 1)      f32  : [b_in, b_img, b_vis] (column form, visual path)
#   whead  (2D, HEAD_W)   bf16 : [[class_w, 0], [0, bbox_w3]]  (+ bhead row)
# ---------------------------------------------------------------------------
def _detr_fused_kernel(
    src_ref, we_ref, qpos_ref,
    win_t_ref, wkd_ref, wdd_ref, whead_ref,
    bias_d_ref, bias_c_ref, bhead_ref,
    head_ref, att_ref,
    *, nb, lp, ep, n_tr, n_cls1):
    f32 = jnp.float32
    bf16 = jnp.bfloat16
    d = qpos_ref.shape[-1]
    cin = src_ref.shape[1]

    # slab indices
    i_img, i_txt, i_vis, i_b1, i_b2 = n_tr, n_tr + 1, n_tr + 2, n_tr + 3, n_tr + 4
    r_bq, r_btxt, r_bb1, r_bb2, r_bin = n_tr, n_tr + 1, n_tr + 2, n_tr + 3, n_tr + 4

    def mm(a, b):
        """(M,K)@(K,N) on the MXU: bf16 operands, f32 accumulation."""
        return jax.lax.dot_general(
            a.astype(bf16), b.astype(bf16),
            (((1,), (0,)), ((), ())), preferred_element_type=f32)

    # --- pooled image feature: lane mean over HW, then a (nb,Cin)@(Cin,D) mm --
    win = wkd_ref[ep:ep + cin, :]                            # (Cin, D)
    mean_x = jnp.mean(src_ref[...].astype(f32), axis=-1)     # (nb, Cin)
    pooled = mm(mean_x, win) + bias_d_ref[r_bin]             # (nb, D) f32
    pooled_rows = jnp.concatenate(
        [jnp.broadcast_to(pooled[j:j + 1], (lp, d)) for j in range(nb)], axis=0)

    # --- language path: all nb*Lp query rows in one M dimension ---------------
    q = mm(we_ref[...], wkd_ref[0:ep, :]) + bias_d_ref[r_bq]   # query_proj (nb*Lp, D)
    h = q + qpos_ref[...] + pooled_rows
    for i in range(n_tr):                                      # stub decoder layers
        h = jnp.maximum(mm(h, wdd_ref[i]) + bias_d_ref[i], 0.0)
    # h == cross_lang == hs[-1]; only the last decoder layer feeds the heads.

    # --- bbox MLP hidden layers ------------------------------------------------
    hb = jnp.maximum(mm(h, wdd_ref[i_b1]) + bias_d_ref[r_bb1], 0.0)
    hb = jnp.maximum(mm(hb, wdd_ref[i_b2]) + bias_d_ref[r_bb2], 0.0)

    # --- fused head: concat([h, hb]) @ [[class_w,0],[0,bbox_w3]] (one matmul) --
    hhb = jnp.concatenate([h.astype(bf16), hb.astype(bf16)], axis=-1)  # (nb*Lp, 2D)
    y = mm(hhb, whead_ref[...]) + bhead_ref[...]
    col = jax.lax.broadcasted_iota(jnp.int32, y.shape, 1)
    is_box = (col >= n_cls1) & (col < n_cls1 + 4)
    y = jnp.where(is_box, jax.nn.sigmoid(y), y)
    y = jnp.where(col < n_cls1 + 4, y, 0.0)       # keep the padding columns clean
    head_ref[...] = y.astype(head_ref.dtype)

    # --- text-sim projection of cross_lang (all rows at once) ------------------
    cl = mm(h, wdd_ref[i_txt]) + bias_d_ref[r_btxt]            # (nb*Lp, D)

    # --- visual path, transposed (D on sublanes, HW on lanes), per image -------
    # TODO(synk): at real DETR sizes (Cin=2048, HW~1000+) tile HW/Cin with an
    # extra "arbitrary" grid axis and single-buffer the invariant weight specs
    # (pipeline_mode=pl.Buffered(1)) to stay inside v7x's 64 MiB VMEM.
    for j in range(nb):
        x = src_ref[j]                                         # (Cin, HW) bf16, NCHW
        sp_t = (mm(win_t_ref[...], x) + bias_c_ref[0]).astype(bf16)      # input_proj^T
        cim_t = (mm(wdd_ref[i_img], sp_t) + bias_c_ref[1]).astype(bf16)  # cross_img^T
        ci_t = (mm(wdd_ref[i_vis], cim_t) + bias_c_ref[2]).astype(bf16)  # visual_sim^T
        # obj-att similarity: (Lp, D) @ (D, HW) -> (Lp, HW), lane dense
        att_ref[j * lp:(j + 1) * lp, :] = mm(
            cl[j * lp:(j + 1) * lp], ci_t).astype(att_ref.dtype)


# ---------------------------------------------------------------------------
# Parameter construction (deterministic, synthetic)
# ---------------------------------------------------------------------------
def sine_query_pos(num_queries, dim):
    """WordPositionEmbeddingSine.weight equivalent: (num_queries, dim)."""
    pos = jnp.arange(num_queries, dtype=jnp.float32)[:, None]
    i = jnp.arange(dim // 2, dtype=jnp.float32)[None, :]
    div = jnp.power(10000.0, 2.0 * i / dim)
    pe = jnp.zeros((num_queries, dim), jnp.float32)
    pe = pe.at[:, 0::2].set(jnp.sin(pos / div))
    pe = pe.at[:, 1::2].set(jnp.cos(pos / div))
    return pe


def init_params(key, num_channels, hidden, num_classes, num_queries,
                query_emb_dim=300, num_dec_layers=3):
    def nrm(k, shape, scale=0.02):
        return scale * jax.random.normal(k, shape, jnp.float32)

    keys = jax.random.split(key, 17)
    p = {
        "query_proj_w": nrm(keys[0], (query_emb_dim, hidden)),
        "query_proj_b": nrm(keys[1], (hidden,)),
        "input_proj_w": nrm(keys[2], (num_channels, hidden)),   # Conv2d 1x1
        "input_proj_b": nrm(keys[3], (hidden,)),
        "class_w": nrm(keys[4], (hidden, num_classes + 1)),
        "class_b": nrm(keys[5], (num_classes + 1,)),
        "bbox_w1": nrm(keys[6], (hidden, hidden)),
        "bbox_b1": nrm(keys[7], (hidden,)),
        "bbox_w2": nrm(keys[8], (hidden, hidden)),
        "bbox_b2": nrm(keys[9], (hidden,)),
        "bbox_w3": nrm(keys[10], (hidden, 4)),
        "bbox_b3": nrm(keys[11], (4,)),
        "text_sim_w": nrm(keys[12], (hidden, hidden)),
        "text_sim_b": nrm(keys[13], (hidden,)),
        "visual_sim_w": nrm(keys[14], (hidden, hidden)),
        "visual_sim_b": nrm(keys[15], (hidden,)),
        "query_pos": sine_query_pos(num_queries, hidden),
    }
    tkeys = jax.random.split(keys[16], 2 * num_dec_layers + 2)
    p["tr_w"] = [nrm(tkeys[2 * i], (hidden, hidden)) for i in range(num_dec_layers)]
    p["tr_b"] = [nrm(tkeys[2 * i + 1], (hidden,)) for i in range(num_dec_layers)]
    p["tr_img_w"] = nrm(tkeys[-2], (hidden, hidden))
    p["tr_img_b"] = nrm(tkeys[-1], (hidden,))
    # TODO(synk): attr_emb (Linear D->66000) and rel_emb (MLP 2D->40000) exist in
    # __init__ but are only exercised with non-empty targets; omitted here.
    return p


def pack_params(p, num_queries):
    """Kernel-ready params: bf16 matmul slabs, f32 bias slabs, padded dims."""
    bf = lambda a: a.astype(jnp.bfloat16)
    n_tr = len(p["tr_w"])
    E, D = p["query_proj_w"].shape
    Cin = p["input_proj_w"].shape[0]
    NC1 = p["class_w"].shape[1]
    Ep = ((E + 127) // 128) * 128                       # 300 -> 384: full lane groups
    Lp = ((max(num_queries, 16) + 15) // 16) * 16       # full bf16 sublane tiles
    HEAD_W = max(128, ((NC1 + 4 + 127) // 128) * 128)   # lane-dense fused head slab

    # [W_q (Ep rows, zero-padded K) ; W_in row-form (pooled path)]
    wkd = jnp.zeros((Ep + Cin, D), jnp.float32)
    wkd = wkd.at[:E].set(p["query_proj_w"])
    wkd = wkd.at[Ep:].set(p["input_proj_w"])

    # every DxD weight in one slab (decoder stack + transposed visual weights)
    wdd = jnp.stack(p["tr_w"] + [p["tr_img_w"].T, p["text_sim_w"],
                                 p["visual_sim_w"].T, p["bbox_w1"], p["bbox_w2"]])

    # fused head: concat([h, hb]) @ [[class_w, 0], [0, bbox_w3]]
    whead = jnp.zeros((2 * D, HEAD_W), jnp.float32)
    whead = whead.at[:D, :NC1].set(p["class_w"])
    whead = whead.at[D:, NC1:NC1 + 4].set(p["bbox_w3"])
    bhead = jnp.zeros((1, HEAD_W), jnp.float32)
    bhead = bhead.at[0, :NC1].set(p["class_b"])
    bhead = bhead.at[0, NC1:NC1 + 4].set(p["bbox_b3"])

    # row biases (1, D) and column biases (D, 1) for the transposed visual path
    bias_d = jnp.stack(p["tr_b"] + [p["query_proj_b"], p["text_sim_b"],
                                    p["bbox_b1"], p["bbox_b2"], p["input_proj_b"]]
                       )[:, None, :]                     # (n_tr+5, 1, D)
    bias_c = jnp.stack([p["input_proj_b"], p["tr_img_b"], p["visual_sim_b"]]
                       )[:, :, None]                     # (3, D, 1)

    qpos = jnp.zeros((Lp, D), jnp.float32).at[:num_queries].set(p["query_pos"])

    return {
        "n_tr": n_tr, "n_cls1": NC1, "head_w": HEAD_W, "hidden": D,
        "ep": Ep, "lp": Lp, "cin": Cin,
        "qpos": qpos,
        "win_t": bf(p["input_proj_w"].T),                # (D, Cin) visual path
        "wkd": bf(wkd), "wdd": bf(wdd), "whead": bf(whead),
        "bias_d": bias_d, "bias_c": bias_c, "bhead": bhead,
    }


def _num_grid_steps(batch):
    """2 "parallel" steps on 2-TensorCore chips (v7x) when the batch splits
    evenly across them; otherwise one fused step with the batch folded into
    the matmul M dimension (best for single-TC v5e/v6e)."""
    try:
        kind = jax.devices()[0].device_kind.lower()
    except Exception:
        kind = ""
    if "v7" in kind and batch >= 2 and batch % 2 == 0:
        return 2
    return 1


# ---------------------------------------------------------------------------
# DETR forward (not is_pretrain, no_img=False, no_obj_att=False, bert_type=None)
# ---------------------------------------------------------------------------
def detr_forward(packed, samples, word_emb, lang_mask, targets):
    # TODO(synk): NestedTensor masks / lang_mask feed the external transformer;
    # unused by the deterministic stub.
    del lang_mask
    B, Cin, H, W = samples.shape                  # NCHW
    HW = H * W
    _, L, E = word_emb.shape
    D = packed["hidden"]
    NC1 = packed["n_cls1"]
    HEAD_W = packed["head_w"]
    n_tr = packed["n_tr"]
    Lp = packed["lp"]
    Ep = packed["ep"]
    assert L <= Lp and E <= Ep and Cin == packed["cin"]

    num_steps = _num_grid_steps(B)
    assert B % num_steps == 0
    nb = B // num_steps

    # backbone stub: identity features, bf16, kept NCHW -> (Cin, HW) per image
    # (no HBM NCHW->NHWC relayout; halves the src DMA vs. f32).
    src = samples.astype(jnp.bfloat16).reshape(B, Cin, HW)

    # language inputs: zero-pad E->Ep / L->Lp, fold batch into the row dim.
    we = jnp.zeros((B, Lp, Ep), jnp.bfloat16)
    we = we.at[:, :L, :E].set(word_emb.astype(jnp.bfloat16))
    we2d = we.reshape(B * Lp, Ep)
    qpos_rows = jnp.tile(packed["qpos"], (B, 1))          # (B*Lp, D)

    def inv(shape):
        zeros = (0,) * len(shape)
        return pl.BlockSpec(shape, lambda s: zeros)

    head, att = pl.pallas_call(
        functools.partial(_detr_fused_kernel, nb=nb, lp=Lp, ep=Ep,
                          n_tr=n_tr, n_cls1=NC1),
        out_shape=(
            jax.ShapeDtypeStruct((B * Lp, HEAD_W), jnp.float32),
            jax.ShapeDtypeStruct((B * Lp, HW), jnp.bfloat16),
        ),
        grid=(num_steps,),
        in_specs=[
            pl.BlockSpec((nb, Cin, HW), lambda s: (s, 0, 0)),   # src (NCHW)
            pl.BlockSpec((nb * Lp, Ep), lambda s: (s, 0)),      # word_emb rows
            pl.BlockSpec((nb * Lp, D), lambda s: (s, 0)),       # query_pos rows
            inv((D, Cin)),                                      # input_proj^T
            inv((Ep + Cin, D)),                                 # [W_q ; W_in]
            inv((n_tr + 5, D, D)),                              # DxD weight slab
            inv((2 * D, HEAD_W)),                               # fused head slab
            inv((n_tr + 5, 1, D)),                              # row biases
            inv((3, D, 1)),                                     # column biases
            inv((1, HEAD_W)),                                   # head bias
        ],
        out_specs=(
            pl.BlockSpec((nb * Lp, HEAD_W), lambda s: (s, 0)),
            pl.BlockSpec((nb * Lp, HW), lambda s: (s, 0)),
        ),
        compiler_params=pltpu.CompilerParams(
            dimension_semantics=("parallel",),
        ),
    )(
        src, we2d, qpos_rows,
        packed["win_t"], packed["wkd"], packed["wdd"], packed["whead"],
        packed["bias_d"], packed["bias_c"], packed["bhead"],
    )

    head = head.reshape(B, Lp, HEAD_W)[:, :L]
    att = att.reshape(B, Lp, H, W)[:, :L].astype(jnp.float32)

    # attr / rel heads: empty targets -> per-layer None (matches PyTorch branch)
    d_num = n_tr
    if len(targets["batch_attr"]) == 0:
        outputs_attr = [None] * d_num
    else:
        raise NotImplementedError("attr head only exercised with empty targets")
    if len(targets["batch_rel"]) == 0:
        outputs_rel = [None] * d_num
    else:
        raise NotImplementedError("rel head only exercised with empty targets")

    return {
        "pred_logits": head[..., :NC1],              # last decoder layer only
        "pred_boxes": head[..., NC1:NC1 + 4],
        "pred_attrs": outputs_attr[-1],
        "pred_rels": outputs_rel[-1],
        "pred_obj_att": att,
    }


# ---------------------------------------------------------------------------
if __name__ == "__main__":
    key = jax.random.PRNGKey(0)
    k_img, k_word, k_param = jax.random.split(key, 3)

    B, Cin, H, W = 2, 4, 16, 16
    hidden, L, num_classes = 32, 8, 10

    samples = jax.random.normal(k_img, (B, Cin, H, W), jnp.float32)   # NCHW
    word_emb = jax.random.normal(k_word, (B, L, 300), jnp.float32)
    lang_mask = jnp.zeros((B, L), jnp.bool_)
    targets = {"batch_attr": [], "attr_ids": [],
               "batch_rel": [], "sub_ids": [], "obj_ids": []}

    params = init_params(k_param, Cin, hidden, num_classes, num_queries=L)
    packed = pack_params(params, num_queries=L)

    out = detr_forward(packed, samples, word_emb, lang_mask, targets)
    for leaf in jax.tree_util.tree_leaves(out):
        jax.block_until_ready(leaf)

    assert out["pred_logits"].shape == (B, L, num_classes + 1)
    assert out["pred_boxes"].shape == (B, L, 4)
    assert out["pred_obj_att"].shape == (B, L, H, W)
    assert out["pred_attrs"] is None and out["pred_rels"] is None
    print("KERNEL_OK")
</pallas_src>

<mosaic_0001>
module attributes {stable_mosaic.version = 11 : i64} {
  func.func @_detr_fused_kernel(%arg0: i32, %arg1: memref<2x4x256xbf16, #tpu.memory_space<vmem>>, %arg2: memref<32x384xbf16, #tpu.memory_space<vmem>>, %arg3: memref<32x32xf32, #tpu.memory_space<vmem>>, %arg4: memref<32x4xbf16, #tpu.memory_space<vmem>>, %arg5: memref<388x32xbf16, #tpu.memory_space<vmem>>, %arg6: memref<8x32x32xbf16, #tpu.memory_space<vmem>>, %arg7: memref<64x128xbf16, #tpu.memory_space<vmem>>, %arg8: memref<8x1x32xf32, #tpu.memory_space<vmem>>, %arg9: memref<3x32x1xf32, #tpu.memory_space<vmem>>, %arg10: memref<1x128xf32, #tpu.memory_space<vmem>>, %arg11: memref<32x128xf32, #tpu.memory_space<vmem>>, %arg12: memref<32x256xbf16, #tpu.memory_space<vmem>>) attributes {dimension_semantics = [#tpu.dimension_semantics<parallel>], iteration_bounds = array<i64: 1>, scalar_prefetch = 0 : i64, scratch_operands = 0 : i64, tpu.core_type = #tpu.core_type<tc>, window_params = [{transform_indices = @transform_0, window_bounds = array<i64: 2, 4, 256>}, {transform_indices = @transform_1, window_bounds = array<i64: 32, 384>}, {transform_indices = @transform_2, window_bounds = array<i64: 32, 32>}, {pipeline_mode = #tpu.pipeline_mode<synchronous>, transform_indices = @transform_3, window_bounds = array<i64: 32, 4>}, {pipeline_mode = #tpu.pipeline_mode<synchronous>, transform_indices = @transform_4, window_bounds = array<i64: 388, 32>}, {pipeline_mode = #tpu.pipeline_mode<synchronous>, transform_indices = @transform_5, window_bounds = array<i64: 8, 32, 32>}, {pipeline_mode = #tpu.pipeline_mode<synchronous>, transform_indices = @transform_6, window_bounds = array<i64: 64, 128>}, {pipeline_mode = #tpu.pipeline_mode<synchronous>, transform_indices = @transform_7, window_bounds = array<i64: 8, 1, 32>}, {pipeline_mode = #tpu.pipeline_mode<synchronous>, transform_indices = @transform_8, window_bounds = array<i64: 3, 32, 1>}, {pipeline_mode = #tpu.pipeline_mode<synchronous>, transform_indices = @transform_9, window_bounds = array<i64: 1, 128>}, {transform_indices = @transform_10, window_bounds = array<i64: 32, 128>}, {transform_indices = @transform_11, window_bounds = array<i64: 32, 256>}]} {
    %c384 = arith.constant 384 : index
    %c0 = arith.constant 0 : index
    %0 = vector.load %arg5[%c384, %c0] : memref<388x32xbf16, #tpu.memory_space<vmem>>, vector<4x32xbf16>
    %c0_0 = arith.constant 0 : index
    %c0_1 = arith.constant 0 : index
    %c0_2 = arith.constant 0 : index
    %1 = vector.load %arg1[%c0_0, %c0_1, %c0_2] : memref<2x4x256xbf16, #tpu.memory_space<vmem>>, vector<2x4x256xbf16>
    %2 = arith.extf %1 : vector<2x4x256xbf16> to vector<2x4x256xf32>
    %cst = arith.constant dense<0.000000e+00> : vector<2x4xf32>
    %3 = vector.multi_reduction <add>, %2, %cst [2] : vector<2x4x256xf32> to vector<2x4xf32>
    %cst_3 = arith.constant 2.560000e+02 : f32
    %4 = vector.broadcast %cst_3 : f32 to vector<2x4xf32>
    %5 = arith.divf %3, %4 : vector<2x4xf32>
    %6 = arith.truncf %5 : vector<2x4xf32> to vector<2x4xbf16>
    %cst_4 = arith.constant dense<0.000000e+00> : vector<2x32xf32>
    %7 = tpu.matmul %6, %0, %cst_4 {dimension_numbers = #tpu.dot_dimension_numbers<[1], [0], [0], [1], [0, 0, 1, 1], [], []>} : vector<2x4xbf16>, vector<4x32xbf16>, vector<2x32xf32> -> vector<2x32xf32>
    %c7 = arith.constant 7 : index
    %c0_5 = arith.constant 0 : index
    %c0_6 = arith.constant 0 : index
    %8 = vector.load %arg8[%c7, %c0_5, %c0_6] : memref<8x1x32xf32, #tpu.memory_space<vmem>>, vector<1x1x32xf32>
    %9 = vector.shape_cast %8 : vector<1x1x32xf32> to vector<1x32xf32>
    %10 = vector.broadcast %9 : vector<1x32xf32> to vector<2x32xf32>
    %11 = arith.addf %7, %10 : vector<2x32xf32>
    %12 = vector.extract_strided_slice %11 {offsets = [0, 0], sizes = [1, 32], strides = [1, 1]} : vector<2x32xf32> to vector<1x32xf32>
    %13 = vector.shape_cast %12 : vector<1x32xf32> to vector<1x32xf32>
    %14 = vector.broadcast %13 : vector<1x32xf32> to vector<16x32xf32>
    %15 = vector.extract_strided_slice %11 {offsets = [1, 0], sizes = [1, 32], strides = [1, 1]} : vector<2x32xf32> to vector<1x32xf32>
    %16 = vector.shape_cast %15 : vector<1x32xf32> to vector<1x32xf32>
    %17 = vector.broadcast %16 : vector<1x32xf32> to vector<16x32xf32>
    %18 = tpu.concatenate %14, %17 in 0 : vector<16x32xf32>, vector<16x32xf32> -> vector<32x32xf32>
    %c0_7 = arith.constant 0 : index
    %c0_8 = arith.constant 0 : index
    %19 = vector.load %arg2[%c0_7, %c0_8] : memref<32x384xbf16, #tpu.memory_space<vmem>>, vector<32x384xbf16>
    %c0_9 = arith.constant 0 : index
    %c0_10 = arith.constant 0 : index
    %20 = vector.load %arg5[%c0_9, %c0_10] : memref<388x32xbf16, #tpu.memory_space<vmem>>, vector<384x32xbf16>
    %cst_11 = arith.constant dense<0.000000e+00> : vector<32x32xf32>
    %21 = tpu.matmul %19, %20, %cst_11 {dimension_numbers = #tpu.dot_dimension_numbers<[1], [0], [0], [1], [0, 0, 1, 1], [], []>} : vector<32x384xbf16>, vector<384x32xbf16>, vector<32x32xf32> -> vector<32x32xf32>
    %c3 = arith.constant 3 : index
    %c0_12 = arith.constant 0 : index
    %c0_13 = arith.constant 0 : index
    %22 = vector.load %arg8[%c3, %c0_12, %c0_13] : memref<8x1x32xf32, #tpu.memory_space<vmem>>, vector<1x1x32xf32>
    %23 = vector.shape_cast %22 : vector<1x1x32xf32> to vector<1x32xf32>
    %24 = vector.broadcast %23 : vector<1x32xf32> to vector<32x32xf32>
    %25 = arith.addf %21, %24 : vector<32x32xf32>
    %c0_14 = arith.constant 0 : index
    %c0_15 = arith.constant 0 : index
    %26 = vector.load %arg3[%c0_14, %c0_15] : memref<32x32xf32, #tpu.memory_space<vmem>>, vector<32x32xf32>
    %27 = arith.addf %25, %26 : vector<32x32xf32>
    %28 = arith.addf %27, %18 : vector<32x32xf32>
    %c0_16 = arith.constant 0 : index
    %c0_17 = arith.constant 0 : index
    %c0_18 = arith.constant 0 : index
    %29 = vector.load %arg6[%c0_16, %c0_17, %c0_18] : memref<8x32x32xbf16, #tpu.memory_space<vmem>>, vector<1x32x32xbf16>
    %30 = vector.shape_cast %29 : vector<1x32x32xbf16> to vector<32x32xbf16>
    %31 = arith.truncf %28 : vector<32x32xf32> to vector<32x32xbf16>
    %cst_19 = arith.constant dense<0.000000e+00> : vector<32x32xf32>
    %32 = tpu.matmul %31, %30, %cst_19 {dimension_numbers = #tpu.dot_dimension_numbers<[1], [0], [0], [1], [0, 0, 1, 1], [], []>} : vector<32x32xbf16>, vector<32x32xbf16>, vector<32x32xf32> -> vector<32x32xf32>
    %c0_20 = arith.constant 0 : index
    %c0_21 = arith.constant 0 : index
    %c0_22 = arith.constant 0 : index
    %33 = vector.load %arg8[%c0_20, %c0_21, %c0_22] : memref<8x1x32xf32, #tpu.memory_space<vmem>>, vector<1x1x32xf32>
    %34 = vector.shape_cast %33 : vector<1x1x32xf32> to vector<1x32xf32>
    %35 = vector.broadcast %34 : vector<1x32xf32> to vector<32x32xf32>
    %36 = arith.addf %32, %35 : vector<32x32xf32>
    %cst_23 = arith.constant 0.000000e+00 : f32
    %37 = vector.broadcast %cst_23 : f32 to vector<32x32xf32>
    %38 = arith.maximumf %36, %37 : vector<32x32xf32>
    %c1 = arith.constant 1 : index
    %c0_24 = arith.constant 0 : index
    %c0_25 = arith.constant 0 : index
    %39 = vector.load %arg6[%c1, %c0_24, %c0_25] : memref<8x32x32xbf16, #tpu.memory_space<vmem>>, vector<1x32x32xbf16>
    %40 = vector.shape_cast %39 : vector<1x32x32xbf16> to vector<32x32xbf16>
    %41 = arith.truncf %38 : vector<32x32xf32> to vector<32x32xbf16>
    %cst_26 = arith.constant dense<0.000000e+00> : vector<32x32xf32>
    %42 = tpu.matmul %41, %40, %cst_26 {dimension_numbers = #tpu.dot_dimension_numbers<[1], [0], [0], [1], [0, 0, 1, 1], [], []>} : vector<32x32xbf16>, vector<32x32xbf16>, vector<32x32xf32> -> vector<32x32xf32>
    %c1_27 = arith.constant 1 : index
    %c0_28 = arith.constant 0 : index
    %c0_29 = arith.constant 0 : index
    %43 = vector.load %arg8[%c1_27, %c0_28, %c0_29] : memref<8x1x32xf32, #tpu.memory_space<vmem>>, vector<1x1x32xf32>
    %44 = vector.shape_cast %43 : vector<1x1x32xf32> to vector<1x32xf32>
    %45 = vector.broadcast %44 : vector<1x32xf32> to vector<32x32xf32>
    %46 = arith.addf %42, %45 : vector<32x32xf32>
    %cst_30 = arith.constant 0.000000e+00 : f32
    %47 = vector.broadcast %cst_30 : f32 to vector<32x32xf32>
    %48 = arith.maximumf %46, %47 : vector<32x32xf32>
    %c2 = arith.constant 2 : index
    %c0_31 = arith.constant 0 : index
    %c0_32 = arith.constant 0 : index
    %49 = vector.load %arg6[%c2, %c0_31, %c0_32] : memref<8x32x32xbf16, #tpu.memory_space<vmem>>, vector<1x32x32xbf16>
    %50 = vector.shape_cast %49 : vector<1x32x32xbf16> to vector<32x32xbf16>
    %51 = arith.truncf %48 : vector<32x32xf32> to vector<32x32xbf16>
    %cst_33 = arith.constant dense<0.000000e+00> : vector<32x32xf32>
    %52 = tpu.matmul %51, %50, %cst_33 {dimension_numbers = #tpu.dot_dimension_numbers<[1], [0], [0], [1], [0, 0, 1, 1], [], []>} : vector<32x32xbf16>, vector<32x32xbf16>, vector<32x32xf32> -> vector<32x32xf32>
    %c2_34 = arith.constant 2 : index
    %c0_35 = arith.constant 0 : index
    %c0_36 = arith.constant 0 : index
    %53 = vector.load %arg8[%c2_34, %c0_35, %c0_36] : memref<8x1x32xf32, #tpu.memory_space<vmem>>, vector<1x1x32xf32>
    %54 = vector.shape_cast %53 : vector<1x1x32xf32> to vector<1x32xf32>
    %55 = vector.broadcast %54 : vector<1x32xf32> to vector<32x32xf32>
    %56 = arith.addf %52, %55 : vector<32x32xf32>
    %cst_37 = arith.constant 0.000000e+00 : f32
    %57 = vector.broadcast %cst_37 : f32 to vector<32x32xf32>
    %58 = arith.maximumf %56, %57 : vector<32x32xf32>
    %c6 = arith.constant 6 : index
    %c0_38 = arith.constant 0 : index
    %c0_39 = arith.constant 0 : index
    %59 = vector.load %arg6[%c6, %c0_38, %c0_39] : memref<8x32x32xbf16, #tpu.memory_space<vmem>>, vector<1x32x32xbf16>
    %60 = vector.shape_cast %59 : vector<1x32x32xbf16> to vector<32x32xbf16>
    %61 = arith.truncf %58 : vector<32x32xf32> to vector<32x32xbf16>
    %cst_40 = arith.constant dense<0.000000e+00> : vector<32x32xf32>
    %62 = tpu.matmul %61, %60, %cst_40 {dimension_numbers = #tpu.dot_dimension_numbers<[1], [0], [0], [1], [0, 0, 1, 1], [], []>} : vector<32x32xbf16>, vector<32x32xbf16>, vector<32x32xf32> -> vector<32x32xf32>
    %c5 = arith.constant 5 : index
    %c0_41 = arith.constant 0 : index
    %c0_42 = arith.constant 0 : index
    %63 = vector.load %arg8[%c5, %c0_41, %c0_42] : memref<8x1x32xf32, #tpu.memory_space<vmem>>, vector<1x1x32xf32>
    %64 = vector.shape_cast %63 : vector<1x1x32xf32> to vector<1x32xf32>
    %65 = vector.broadcast %64 : vector<1x32xf32> to vector<32x32xf32>
    %66 = arith.addf %62, %65 : vector<32x32xf32>
    %cst_43 = arith.constant 0.000000e+00 : f32
    %67 = vector.broadcast %cst_43 : f32 to vector<32x32xf32>
    %68 = arith.maximumf %66, %67 : vector<32x32xf32>
    %c7_44 = arith.constant 7 : index
    %c0_45 = arith.constant 0 : index
    %c0_46 = arith.constant 0 : index
    %69 = vector.load %arg6[%c7_44, %c0_45, %c0_46] : memref<8x32x32xbf16, #tpu.memory_space<vmem>>, vector<1x32x32xbf16>
    %70 = vector.shape_cast %69 : vector<1x32x32xbf16> to vector<32x32xbf16>
    %71 = arith.truncf %68 : vector<32x32xf32> to vector<32x32xbf16>
    %cst_47 = arith.constant dense<0.000000e+00> : vector<32x32xf32>
    %72 = tpu.matmul %71, %70, %cst_47 {dimension_numbers = #tpu.dot_dimension_numbers<[1], [0], [0], [1], [0, 0, 1, 1], [], []>} : vector<32x32xbf16>, vector<32x32xbf16>, vector<32x32xf32> -> vector<32x32xf32>
    %c6_48 = arith.constant 6 : index
    %c0_49 = arith.constant 0 : index
    %c0_50 = arith.constant 0 : index
    %73 = vector.load %arg8[%c6_48, %c0_49, %c0_50] : memref<8x1x32xf32, #tpu.memory_space<vmem>>, vector<1x1x32xf32>
    %74 = vector.shape_cast %73 : vector<1x1x32xf32> to vector<1x32xf32>
    %75 = vector.broadcast %74 : vector<1x32xf32> to vector<32x32xf32>
    %76 = arith.addf %72, %75 : vector<32x32xf32>
    %cst_51 = arith.constant 0.000000e+00 : f32
    %77 = vector.broadcast %cst_51 : f32 to vector<32x32xf32>
    %78 = arith.maximumf %76, %77 : vector<32x32xf32>
    %79 = arith.truncf %58 : vector<32x32xf32> to vector<32x32xbf16>
    %80 = arith.truncf %78 : vector<32x32xf32> to vector<32x32xbf16>
    %81 = tpu.concatenate %79, %80 in 1 : vector<32x32xbf16>, vector<32x32xbf16> -> vector<32x64xbf16>
    %c0_52 = arith.constant 0 : index
    %c0_53 = arith.constant 0 : index
    %82 = vector.load %arg7[%c0_52, %c0_53] : memref<64x128xbf16, #tpu.memory_space<vmem>>, vector<64x128xbf16>
    %cst_54 = arith.constant dense<0.000000e+00> : vector<32x128xf32>
    %83 = tpu.matmul %81, %82, %cst_54 {dimension_numbers = #tpu.dot_dimension_numbers<[1], [0], [0], [1], [0, 0, 1, 1], [], []>} : vector<32x64xbf16>, vector<64x128xbf16>, vector<32x128xf32> -> vector<32x128xf32>
    %c0_55 = arith.constant 0 : index
    %c0_56 = arith.constant 0 : index
    %84 = vector.load %arg10[%c0_55, %c0_56] : memref<1x128xf32, #tpu.memory_space<vmem>>, vector<1x128xf32>
    %85 = vector.broadcast %84 : vector<1x128xf32> to vector<32x128xf32>
    %86 = arith.addf %83, %85 : vector<32x128xf32>
    %87 = tpu.iota {dimensions = array<i32: 1>} : vector<32x128xi32>
    %c11_i32 = arith.constant 11 : i32
    %88 = vector.broadcast %c11_i32 : i32 to vector<32x128xi32>
    %89 = arith.cmpi sge, %87, %88 : vector<32x128xi32>
    %c15_i32 = arith.constant 15 : i32
    %90 = vector.broadcast %c15_i32 : i32 to vector<32x128xi32>
    %91 = arith.cmpi slt, %87, %90 : vector<32x128xi32>
    %92 = arith.andi %89, %91 : vector<32x128xi1>
    %93 = arith.negf %86 : vector<32x128xf32>
    %94 = math.exp %93 : vector<32x128xf32>
    %cst_57 = arith.constant 1.000000e+00 : f32
    %95 = vector.broadcast %cst_57 : f32 to vector<32x128xf32>
    %96 = arith.addf %95, %94 : vector<32x128xf32>
    %97 = arith.divf %95, %96 : vector<32x128xf32>
    %98 = arith.select %92, %97, %86 : vector<32x128xi1>, vector<32x128xf32>
    %c15_i32_58 = arith.constant 15 : i32
    %99 = vector.broadcast %c15_i32_58 : i32 to vector<32x128xi32>
    %100 = arith.cmpi slt, %87, %99 : vector<32x128xi32>
    %cst_59 = arith.constant 0.000000e+00 : f32
    %101 = vector.broadcast %cst_59 : f32 to vector<32x128xf32>
    %102 = arith.select %100, %98, %101 : vector<32x128xi1>, vector<32x128xf32>
    %c0_60 = arith.constant 0 : index
    %c0_61 = arith.constant 0 : index
    %103 = vector.load %arg11[%c0_60, %c0_61] : memref<32x128xf32, #tpu.memory_space<vmem>>, vector<32x128xf32>
    tpu.vector_store %arg11[%c0_60, %c0_61], %102 {strides = array<i32>} : memref<32x128xf32, #tpu.memory_space<vmem>>, vector<32x128xf32>,
    %c4 = arith.constant 4 : index
    %c0_62 = arith.constant 0 : index
    %c0_63 = arith.constant 0 : index
    %104 = vector.load %arg6[%c4, %c0_62, %c0_63] : memref<8x32x32xbf16, #tpu.memory_space<vmem>>, vector<1x32x32xbf16>
    %105 = vector.shape_cast %104 : vector<1x32x32xbf16> to vector<32x32xbf16>
    %106 = arith.truncf %58 : vector<32x32xf32> to vector<32x32xbf16>
    %cst_64 = arith.constant dense<0.000000e+00> : vector<32x32xf32>
    %107 = tpu.matmul %106, %105, %cst_64 {dimension_numbers = #tpu.dot_dimension_numbers<[1], [0], [0], [1], [0, 0, 1, 1], [], []>} : vector<32x32xbf16>, vector<32x32xbf16>, vector<32x32xf32> -> vector<32x32xf32>
    %c4_65 = arith.constant 4 : index
    %c0_66 = arith.constant 0 : index
    %c0_67 = arith.constant 0 : index
    %108 = vector.load %arg8[%c4_65, %c0_66, %c0_67] : memref<8x1x32xf32, #tpu.memory_space<vmem>>, vector<1x1x32xf32>
    %109 = vector.shape_cast %108 : vector<1x1x32xf32> to vector<1x32xf32>
    %110 = vector.broadcast %109 : vector<1x32xf32> to vector<32x32xf32>
    %111 = arith.addf %107, %110 : vector<32x32xf32>
    %c0_68 = arith.constant 0 : index
    %c0_69 = arith.constant 0 : index
    %c0_70 = arith.constant 0 : index
    %112 = vector.load %arg1[%c0_68, %c0_69, %c0_70] : memref<2x4x256xbf16, #tpu.memory_space<vmem>>, vector<1x4x256xbf16>
    %113 = vector.shape_cast %112 : vector<1x4x256xbf16> to vector<4x256xbf16>
    %c0_71 = arith.constant 0 : index
    %c0_72 = arith.constant 0 : index
    %114 = vector.load %arg4[%c0_71, %c0_72] : memref<32x4xbf16, #tpu.memory_space<vmem>>, vector<32x4xbf16>
    %cst_73 = arith.constant dense<0.000000e+00> : vector<32x256xf32>
    %115 = tpu.matmul %114, %113, %cst_73 {dimension_numbers = #tpu.dot_dimension_numbers<[1], [0], [0], [1], [0, 0, 1, 1], [], []>} : vector<32x4xbf16>, vector<4x256xbf16>, vector<32x256xf32> -> vector<32x256xf32>
    %c0_74 = arith.constant 0 : index
    %c0_75 = arith.constant 0 : index
    %c0_76 = arith.constant 0 : index
    %116 = vector.load %arg9[%c0_74, %c0_75, %c0_76] : memref<3x32x1xf32, #tpu.memory_space<vmem>>, vector<1x32x1xf32>
    %117 = vector.shape_cast %116 : vector<1x32x1xf32> to vector<32x1xf32>
    %118 = vector.broadcast %117 : vector<32x1xf32> to vector<32x256xf32>
    %119 = arith.addf %115, %118 : vector<32x256xf32>
    %120 = arith.truncf %119 : vector<32x256xf32> to vector<32x256xbf16>
    %c3_77 = arith.constant 3 : index
    %c0_78 = arith.constant 0 : index
    %c0_79 = arith.constant 0 : index
    %121 = vector.load %arg6[%c3_77, %c0_78, %c0_79] : memref<8x32x32xbf16, #tpu.memory_space<vmem>>, vector<1x32x32xbf16>
    %122 = vector.shape_cast %121 : vector<1x32x32xbf16> to vector<32x32xbf16>
    %cst_80 = arith.constant dense<0.000000e+00> : vector<32x256xf32>
    %123 = tpu.matmul %122, %120, %cst_80 {dimension_numbers = #tpu.dot_dimension_numbers<[1], [0], [0], [1], [0, 0, 1, 1], [], []>} : vector<32x32xbf16>, vector<32x256xbf16>, vector<32x256xf32> -> vector<32x256xf32>
    %c1_81 = arith.constant 1 : index
    %c0_82 = arith.constant 0 : index
    %c0_83 = arith.constant 0 : index
    %124 = vector.load %arg9[%c1_81, %c0_82, %c0_83] : memref<3x32x1xf32, #tpu.memory_space<vmem>>, vector<1x32x1xf32>
    %125 = vector.shape_cast %124 : vector<1x32x1xf32> to vector<32x1xf32>
    %126 = vector.broadcast %125 : vector<32x1xf32> to vector<32x256xf32>
    %127 = arith.addf %123, %126 : vector<32x256xf32>
    %128 = arith.truncf %127 : vector<32x256xf32> to vector<32x256xbf16>
    %c5_84 = arith.constant 5 : index
    %c0_85 = arith.constant 0 : index
    %c0_86 = arith.constant 0 : index
    %129 = vector.load %arg6[%c5_84, %c0_85, %c0_86] : memref<8x32x32xbf16, #tpu.memory_space<vmem>>, vector<1x32x32xbf16>
    %130 = vector.shape_cast %129 : vector<1x32x32xbf16> to vector<32x32xbf16>
    %cst_87 = arith.constant dense<0.000000e+00> : vector<32x256xf32>
    %131 = tpu.matmul %130, %128, %cst_87 {dimension_numbers = #tpu.dot_dimension_numbers<[1], [0], [0], [1], [0, 0, 1, 1], [], []>} : vector<32x32xbf16>, vector<32x256xbf16>, vector<32x256xf32> -> vector<32x256xf32>
    %c2_88 = arith.constant 2 : index
    %c0_89 = arith.constant 0 : index
    %c0_90 = arith.constant 0 : index
    %132 = vector.load %arg9[%c2_88, %c0_89, %c0_90] : memref<3x32x1xf32, #tpu.memory_space<vmem>>, vector<1x32x1xf32>
    %133 = vector.shape_cast %132 : vector<1x32x1xf32> to vector<32x1xf32>
    %134 = vector.broadcast %133 : vector<32x1xf32> to vector<32x256xf32>
    %135 = arith.addf %131, %134 : vector<32x256xf32>
    %136 = arith.truncf %135 : vector<32x256xf32> to vector<32x256xbf16>
    %137 = vector.extract_strided_slice %111 {offsets = [0, 0], sizes = [16, 32], strides = [1, 1]} : vector<32x32xf32> to vector<16x32xf32>
    %138 = arith.truncf %137 : vector<16x32xf32> to vector<16x32xbf16>
    %cst_91 = arith.constant dense<0.000000e+00> : vector<16x256xf32>
    %139 = tpu.matmul %138, %136, %cst_91 {dimension_numbers = #tpu.dot_dimension_numbers<[1], [0], [0], [1], [0, 0, 1, 1], [], []>} : vector<16x32xbf16>, vector<32x256xbf16>, vector<16x256xf32> -> vector<16x256xf32>
    %140 = arith.truncf %139 : vector<16x256xf32> to vector<16x256xbf16>
    %c0_92 = arith.constant 0 : index
    %c0_93 = arith.constant 0 : index
    %141 = vector.load %arg12[%c0_92, %c0_93] : memref<32x256xbf16, #tpu.memory_space<vmem>>, vector<16x256xbf16>
    tpu.vector_store %arg12[%c0_92, %c0_93], %140 {strides = array<i32>} : memref<32x256xbf16, #tpu.memory_space<vmem>>, vector<16x256xbf16>,
    %c1_94 = arith.constant 1 : index
    %c0_95 = arith.constant 0 : index
    %c0_96 = arith.constant 0 : index
    %142 = vector.load %arg1[%c1_94, %c0_95, %c0_96] : memref<2x4x256xbf16, #tpu.memory_space<vmem>>, vector<1x4x256xbf16>
    %143 = vector.shape_cast %142 : vector<1x4x256xbf16> to vector<4x256xbf16>
    %c0_97 = arith.constant 0 : index
    %c0_98 = arith.constant 0 : index
    %144 = vector.load %arg4[%c0_97, %c0_98] : memref<32x4xbf16, #tpu.memory_space<vmem>>, vector<32x4xbf16>
    %cst_99 = arith.constant dense<0.000000e+00> : vector<32x256xf32>
    %145 = tpu.matmul %144, %143, %cst_99 {dimension_numbers = #tpu.dot_dimension_numbers<[1], [0], [0], [1], [0, 0, 1, 1], [], []>} : vector<32x4xbf16>, vector<4x256xbf16>, vector<32x256xf32> -> vector<32x256xf32>
    %c0_100 = arith.constant 0 : index
    %c0_101 = arith.constant 0 : index
    %c0_102 = arith.constant 0 : index
    %146 = vector.load %arg9[%c0_100, %c0_101, %c0_102] : memref<3x32x1xf32, #tpu.memory_space<vmem>>, vector<1x32x1xf32>
    %147 = vector.shape_cast %146 : vector<1x32x1xf32> to vector<32x1xf32>
    %148 = vector.broadcast %147 : vector<32x1xf32> to vector<32x256xf32>
    %149 = arith.addf %145, %148 : vector<32x256xf32>
    %150 = arith.truncf %149 : vector<32x256xf32> to vector<32x256xbf16>
    %c3_103 = arith.constant 3 : index
    %c0_104 = arith.constant 0 : index
    %c0_105 = arith.constant 0 : index
    %151 = vector.load %arg6[%c3_103, %c0_104, %c0_105] : memref<8x32x32xbf16, #tpu.memory_space<vmem>>, vector<1x32x32xbf16>
    %152 = vector.shape_cast %151 : vector<1x32x32xbf16> to vector<32x32xbf16>
    %cst_106 = arith.constant dense<0.000000e+00> : vector<32x256xf32>
    %153 = tpu.matmul %152, %150, %cst_106 {dimension_numbers = #tpu.dot_dimension_numbers<[1], [0], [0], [1], [0, 0, 1, 1], [], []>} : vector<32x32xbf16>, vector<32x256xbf16>, vector<32x256xf32> -> vector<32x256xf32>
    %c1_107 = arith.constant 1 : index
    %c0_108 = arith.constant 0 : index
    %c0_109 = arith.constant 0 : index
    %154 = vector.load %arg9[%c1_107, %c0_108, %c0_109] : memref<3x32x1xf32, #tpu.memory_space<vmem>>, vector<1x32x1xf32>
    %155 = vector.shape_cast %154 : vector<1x32x1xf32> to vector<32x1xf32>
    %156 = vector.broadcast %155 : vector<32x1xf32> to vector<32x256xf32>
    %157 = arith.addf %153, %156 : vector<32x256xf32>
    %158 = arith.truncf %157 : vector<32x256xf32> to vector<32x256xbf16>
    %c5_110 = arith.constant 5 : index
    %c0_111 = arith.constant 0 : index
    %c0_112 = arith.constant 0 : index
    %159 = vector.load %arg6[%c5_110, %c0_111, %c0_112] : memref<8x32x32xbf16, #tpu.memory_space<vmem>>, vector<1x32x32xbf16>
    %160 = vector.shape_cast %159 : vector<1x32x32xbf16> to vector<32x32xbf16>
    %cst_113 = arith.constant dense<0.000000e+00> : vector<32x256xf32>
    %161 = tpu.matmul %160, %158, %cst_113 {dimension_numbers = #tpu.dot_dimension_numbers<[1], [0], [0], [1], [0, 0, 1, 1], [], []>} : vector<32x32xbf16>, vector<32x256xbf16>, vector<32x256xf32> -> vector<32x256xf32>
    %c2_114 = arith.constant 2 : index
    %c0_115 = arith.constant 0 : index
    %c0_116 = arith.constant 0 : index
    %162 = vector.load %arg9[%c2_114, %c0_115, %c0_116] : memref<3x32x1xf32, #tpu.memory_space<vmem>>, vector<1x32x1xf32>
    %163 = vector.shape_cast %162 : vector<1x32x1xf32> to vector<32x1xf32>
    %164 = vector.broadcast %163 : vector<32x1xf32> to vector<32x256xf32>
    %165 = arith.addf %161, %164 : vector<32x256xf32>
    %166 = arith.truncf %165 : vector<32x256xf32> to vector<32x256xbf16>
    %167 = vector.extract_strided_slice %111 {offsets = [16, 0], sizes = [16, 32], strides = [1, 1]} : vector<32x32xf32> to vector<16x32xf32>
    %168 = arith.truncf %167 : vector<16x32xf32> to vector<16x32xbf16>
    %cst_117 = arith.constant dense<0.000000e+00> : vector<16x256xf32>
    %169 = tpu.matmul %168, %166, %cst_117 {dimension_numbers = #tpu.dot_dimension_numbers<[1], [0], [0], [1], [0, 0, 1, 1], [], []>} : vector<16x32xbf16>, vector<32x256xbf16>, vector<16x256xf32> -> vector<16x256xf32>
    %170 = arith.truncf %169 : vector<16x256xf32> to vector<16x256xbf16>
    %c16 = arith.constant 16 : index
    %c0_118 = arith.constant 0 : index
    %171 = vector.load %arg12[%c16, %c0_118] : memref<32x256xbf16, #tpu.memory_space<vmem>>, vector<16x256xbf16>
    tpu.vector_store %arg12[%c16, %c0_118], %170 {strides = array<i32>} : memref<32x256xbf16, #tpu.memory_space<vmem>>, vector<16x256xbf16>,
    return
  }
  func.func @transform_0(%arg0: i32) -> (i32, i32, i32) {
    %c0_i32 = arith.constant 0 : i32
    %c0_i32_0 = arith.constant 0 : i32
    %c0_i32_1 = arith.constant 0 : i32
    return %arg0, %c0_i32, %c0_i32_0 : i32, i32, i32
  }
  func.func @transform_1(%arg0: i32) -> (i32, i32) {
    %c0_i32 = arith.constant 0 : i32
    %c0_i32_0 = arith.constant 0 : i32
    return %arg0, %c0_i32 : i32, i32
  }
  func.func @transform_2(%arg0: i32) -> (i32, i32) {
    %c0_i32 = arith.constant 0 : i32
    %c0_i32_0 = arith.constant 0 : i32
    return %arg0, %c0_i32 : i32, i32
  }
  func.func @transform_3(%arg0: i32) -> (i32, i32) {
    %c0_i32 = arith.constant 0 : i32
    %c0_i32_0 = arith.constant 0 : i32
    %c0_i32_1 = arith.constant 0 : i32
    return %c0_i32, %c0_i32_0 : i32, i32
  }
  func.func @transform_4(%arg0: i32) -> (i32, i32) {
    %c0_i32 = arith.constant 0 : i32
    %c0_i32_0 = arith.constant 0 : i32
    %c0_i32_1 = arith.constant 0 : i32
    return %c0_i32, %c0_i32_0 : i32, i32
  }
  func.func @transform_5(%arg0: i32) -> (i32, i32, i32) {
    %c0_i32 = arith.constant 0 : i32
    %c0_i32_0 = arith.constant 0 : i32
    %c0_i32_1 = arith.constant 0 : i32
    %c0_i32_2 = arith.constant 0 : i32
    return %c0_i32, %c0_i32_0, %c0_i32_1 : i32, i32, i32
  }
  func.func @transform_6(%arg0: i32) -> (i32, i32) {
    %c0_i32 = arith.constant 0 : i32
    %c0_i32_0 = arith.constant 0 : i32
    %c0_i32_1 = arith.constant 0 : i32
    return %c0_i32, %c0_i32_0 : i32, i32
  }
  func.func @transform_7(%arg0: i32) -> (i32, i32, i32) {
    %c0_i32 = arith.constant 0 : i32
    %c0_i32_0 = arith.constant 0 : i32
    %c0_i32_1 = arith.constant 0 : i32
    %c0_i32_2 = arith.constant 0 : i32
    return %c0_i32, %c0_i32_0, %c0_i32_1 : i32, i32, i32
  }
  func.func @transform_8(%arg0: i32) -> (i32, i32, i32) {
    %c0_i32 = arith.constant 0 : i32
    %c0_i32_0 = arith.constant 0 : i32
    %c0_i32_1 = arith.constant 0 : i32
    %c0_i32_2 = arith.constant 0 : i32
    return %c0_i32, %c0_i32_0, %c0_i32_1 : i32, i32, i32
  }
  func.func @transform_9(%arg0: i32) -> (i32, i32) {
    %c0_i32 = arith.constant 0 : i32
    %c0_i32_0 = arith.constant 0 : i32
    %c0_i32_1 = arith.constant 0 : i32
    return %c0_i32, %c0_i32_0 : i32, i32
  }
  func.func @transform_10(%arg0: i32) -> (i32, i32) {
    %c0_i32 = arith.constant 0 : i32
    %c0_i32_0 = arith.constant 0 : i32
    return %arg0, %c0_i32 : i32, i32
  }
  func.func @transform_11(%arg0: i32) -> (i32, i32) {
    %c0_i32 = arith.constant 0 : i32
    %c0_i32_0 = arith.constant 0 : i32
    return %arg0, %c0_i32 : i32, i32
  }
}

</mosaic_0001>

<bundles_post_ra>
// kernel: tpu_custom_call.1
= control target key start
LH: loop header
LB: loop body
LE: loop exit
PB: predicated region body
PF: predicated region fallthrough
CT: control target
= control target key end

     0   :  { %17 = vsyncpa [#allocation3], 0  ;;  %vm51_vm0 = vcmask 1043456   ;;  %vm96_vm1 = vcmask 1041408   ;;  %v2408_v18 = vmov 0.0   ;;  %vm2409_vm2 = vmmov 0   ;;  %s2911_s0 = inlined_call_operand.vmem [shape: bf16[2,4,256], index: 0, kind: input, shape index: {}]   ;;  %s2912_s1 = inlined_call_operand.vmem [shape: bf16[32,384], index: 1, kind: input, shape index: {}]   ;;  %s2913_s2 = inlined_call_operand.vmem [shape: f32[32,32], index: 2, kind: input, shape index: {}]   ;;  %s2914_s3 = inlined_call_operand.vmem [shape: bf16[32,4], index: 3, kind: input, shape index: {}]   ;;  %s2915_s4 = inlined_call_operand.vmem [shape: bf16[388,32], index: 4, kind: input, shape index: {}]   ;;  %s2916_s5 = inlined_call_operand.vmem [shape: bf16[8,32,32], index: 5, kind: input, shape index: {}]   ;;  %s2917_s6 = inlined_call_operand.vmem [shape: bf16[64,128], index: 6, kind: input, shape index: {}]   ;;  %s2918_s7 = inlined_call_operand.vmem [shape: f32[8,1,32], index: 7, kind: input, shape index: {}]   ;;  %s2919_s8 = inlined_call_operand.vmem [shape: f32[3,32,1], index: 8, kind: input, shape index: {}]   ;;  %s2920_s9 = inlined_call_operand.vmem [shape: f32[1,128], index: 9, kind: input, shape index: {}]   ;;  %s2921_s10 = inlined_call_operand.hbm [shape: f32[32,128], index: 10, kind: output, shape index: {0}]   ;;  %s2922_s11 = inlined_call_operand.hbm [shape: bf16[32,256], index: 11, kind: output, shape index: {1}]  }
   0x1   :  { %v2115_v0 = vld [vmem:[%s2911_s0] sm:$0xff]   ;;  %v2286_v13 = vld [vmem:[%s2915_s4 + $0x48] sm:$0xff]   ;;  %v2288_v15 = vld [vmem:[%s2915_s4 + $0x50] sm:$0xff]   ;;  %2188 = vmatprep.subr.bf16.mxu0 %v2408_v18  ;;  %2190 = vmatprep.mubr.msk.bf16.mxu0 %vm2409_vm2, %v2408_v18 }
   0x2   :  { %v2116_v1 = vunpack.c.l.bf16 %v2115_v0  ;;  %v2117_v2 = vunpack.c.h.bf16 %v2115_v0  ;;  %v2284_v11 = vld [vmem:[%s2915_s4 + $0x40] sm:$0xff]   ;;  %v2287_v14 = vld [vmem:[%s2915_s4 + $0x8] sm:$0xff]   ;;  %v2289_v16 = vld [vmem:[%s2915_s4 + $0x10] sm:$0xff]  }
   0x3   :  { %v2285_v12 = vld [vmem:[%s2915_s4] sm:$0xff]   ;;  %2120 = vmatprep.subr.bf16.mxu1 %v2284_v11  ;;  %v2290_v20 = vld [vmem:[%s2915_s4 + $0x58] sm:$0xff]   ;;  %v2296_v25 = vld [vmem:[%s2915_s4 + $0x68] sm:$0xff]  }
   0x4   :  { %v47_v3 = vcombine.high %v2116_v1, %v2116_v1  ;;  %v52_v4 = vsel %vm51_vm0, %v2116_v1, 0.0  ;;  %v48_v5 = vcombine.high %v2117_v2, %v2117_v2  ;;  %v57_v6 = vsel %vm51_vm0, %v2117_v2, 0.0  ;;  %2121 = vmatpush3.bf16.msra.mxu1 %v2285_v12  ;;  %v40_v17 = vld [vmem:[%s2915_s4 + $0xc0] sm:$0x3]  ;;  %v2291_v21 = vld [vmem:[%s2915_s4 + $0x18] sm:$0xff]   ;;  %v2297_v26 = vld [vmem:[%s2915_s4 + $0x28] sm:$0xff]  }
   0x5   :  { %2122 = vmatprep.subr.bf16.mxu1 %v2286_v13  ;;  %v98_v19 = vsel %vm96_vm1, %v40_v17, 0  ;;  %v2292_v22 = vld [vmem:[%s2915_s4 + $0x80] sm:$0xff]  }
   0x6   :  { %v53_v7 = vsel %vm51_vm0, %v47_v3, 0.0  ;;  %v58_v8 = vsel %vm51_vm0, %v48_v5, 0.0  ;;  %2189 = vmatpush3.bf16.msra.mxu0 %v98_v19  ;;  %v2293_v23 = vld [vmem:[%s2915_s4 + $0x60] sm:$0xff]  }
   0x7   :  { %v54_v9 = vadd.f32 %v53_v7, %v52_v4  ;;  %v59_v10 = vadd.f32 %v58_v8, %v57_v6  ;;  %2194 = vmatprep.subr.bf16.mxu0 %v2292_v22  ;;  %v2294_v24 = vld [vmem:[%s2915_s4 + $0x20] sm:$0xff]  }
   0x8   :  { %2123 = vmatpush3.bf16.msra.mxu1 %v2287_v14 }
   0x9   :  { %55 = vadd.xlane.f32.xlu0 %v54_v9  ;;  %2124 = vmatprep.subr.bf16.mxu1 %v2288_v15 }
   0xc   :  { %2125 = vmatpush3.bf16.msra.mxu1 %v2289_v16 }
   0xd   :  { %60 = vadd.xlane.f32.xlu0 %v59_v10  ;;  %2126 = vmatprep.subr.bf16.mxu1 %v2290_v20 }
  0x10   :  { %2127 = vmatpush3.bf16.msra.mxu1 %v2291_v21 }
  0x11   :  { %2128 = vmatprep.subr.bf16.mxu1 %v2293_v23 }
  0x14   :  { %2129 = vmatpush3.bf16.msra.mxu1 %v2294_v24 }
  0x15   :  { %2130 = vmatprep.subr.bf16.mxu1 %v2296_v25 }
  0x18   :  { %2131 = vmatpush3.bf16.msra.mxu1 %v2297_v26 }
  0x19   :  { %18 = vsyncpa [#allocation5], 0  ;;  %v2299_v27 = vld [vmem:[%s2915_s4 + $0x70] sm:$0xff]   ;;  %v2302_v29 = vld [vmem:[%s2915_s4 + $0x78] sm:$0xff]   ;;  %v79_v35 = vlaneseq  ;;  %vm89_vm3 = vcmask 1041409   ;;  %vm92_vm4 = vcmask 31744  }
  0x1a   :  { %v2300_v28 = vld [vmem:[%s2915_s4 + $0x30] sm:$0xff]   ;;  %2132 = vmatprep.subr.bf16.mxu1 %v2299_v27  ;;  %v2303_v30 = vld [vmem:[%s2915_s4 + $0x38] sm:$0xff]   ;;  %v2305_v31 = vld [vmem:[%s2912_s1] ss:$12 sps:$4 sm:$0xff]   ;;  %vm523_vm5 = vcmask 261120   ;;  %s2411_s14 = smov 32  }
  0x1b   :  { %v2307_v32 = vld [vmem:[%s2912_s1 + $0x4] ss:$12 sps:$4 sm:$0xff]   ;;  %v2310_v33 = vld [vmem:[%s2912_s1 + $0x1c] ss:$12 sps:$4 sm:$0xff]   ;;  %v2546_v38 = vand.u32 127, %v79_v35  ;;  %v2548_v39 = vshrl.u32 %v79_v35, 7 }
  0x1c   :  { %2133 = vmatpush3.bf16.msra.mxu1 %v2300_v28  ;;  %420 = vmatprep.mubr.bf16.mxu1 %v2307_v32  ;;  %v2312_v34 = vld [vmem:[%s2912_s1 + $0x18] ss:$12 sps:$4 sm:$0xff]   ;;  %v2314_v50 = vld [vmem:[%s2912_s1 + $0x8] ss:$12 sps:$4 sm:$0xff]   ;;  %v2315_v59 = vld [vmem:[%s2912_s1 + $0x20] ss:$12 sps:$4 sm:$0xff]  }
  0x1d   :  { %2134 = vmatprep.subr.bf16.mxu1 %v2302_v29  ;;  %v83_v43 = vsub.s32 %v2546_v38, %v2548_v39  ;;  %v2295_v52 = vld [vmem:[%s2915_s4 + $0x88] sm:$0xff]   ;;  %v2298_v53 = vld [vmem:[%s2915_s4 + $0x90] sm:$0xff]   ;;  %v2301_v54 = vld [vmem:[%s2915_s4 + $0x98] sm:$0xff]   ;;  %v146_v19 = vsub.s32 1, %v2548_v39  ;;  %v142_v21 = vsub.s32 0, %v2548_v39  ;;  %vm978_vm6 = vcmask 523264  }
  0x1e   :  { %v2304_v55 = vld [vmem:[%s2915_s4 + $0xa0] sm:$0xff]   ;;  %v2308_v56 = vld [vmem:[%s2915_s4 + $0xa8] sm:$0xff]   ;;  %v2309_v57 = vld [vmem:[%s2915_s4 + $0xb0] sm:$0xff]   ;;  %vm1032_vm7 = vcmp.ge.s32.totalorder %v2546_v38, 11  ;;  %vm1033_vm8 = vcmp.lt.s32.totalorder %v2546_v38, 15 }
  0x1f   :  { %v2313_v58 = vld [vmem:[%s2915_s4 + $0xb8] sm:$0xff]   ;;  %v2316_v8 = vld [vmem:[%s2916_s5] sm:$0xff]   ;;  %v2317_v9 = vld [vmem:[%s2916_s5 + $0x8] sm:$0xff]  }
  0x20   :  { %2135 = vmatpush3.bf16.msra.mxu1 %v2303_v30  ;;  %v2318_v10 = vld [vmem:[%s2916_s5 + $0x10] sm:$0xff]   ;;  %v1943_v15 = vld [vmem:[%s2918_s7 + $0x7] ss:$0 sm:$0xff]  ;;  %v1946_v16 = vld [vmem:[%s2918_s7 + $0x3] ss:$0 sm:$0xff] }
  0x21   :  { %2222 = vmatprep.subr.bf16.mxu1 %v2318_v10  ;;  %v488_v23 = vld [vmem:[%s2913_s2 + $0x10] sm:$0xff]  ;;  %v486_v27 = vld [vmem:[%s2913_s2] sm:$0xff]  ;;  %v489_v30 = vld [vmem:[%s2913_s2 + $0x18] sm:$0xff] }
  0x22   :  { %vm2813_vm9 = vmand %vm1032_vm7, %vm1033_vm8 }
  0x23   :  { %421 = vmatmul.mubr.bf16.vlgmr.msra.gmra.mrb[0].mxu1 %v2305_v31 }
  0x24   :  { %428 = vmatprep.mubr.bf16.mxu1 %v2310_v33  ;;  %2223 = vmatpush3.bf16.msra.mxu1 %v2318_v10 }
  0x2b   :  { %429 = vmatmul.mubr.bf16.gmra.mrb[4].mxu1 %v2312_v34 }
  0x96   :  { %v56_v36 = vpop.xlane.xlu0 %55 }
  0x97   :  { %v63_v37 = vmul.f32 0.00390625, %v56_v36  ;;  %v487_v36 = vld [vmem:[%s2913_s2 + $0x8] sm:$0xff] }
  0x99   :  { %v65_v40 = vpack.c.bf16 %v63_v37, %v63_v37 }
  0x9a   :  { %v61_v41 = vpop.xlane.xlu0 %60 }
  0x9b   :  { %v64_v42 = vmul.f32 0.00390625, %v61_v41  ;;  %v77_v44 = vunpack.c.l.b16 %v65_v40 }
  0x9d   :  { %v66_v45 = vpack.c.bf16 %v64_v42, %v64_v42  ;;  %v84_v47 = vrot.slane %v77_v44, %v83_v43 }
  0x9f   :  { %v78_v46 = vunpack.c.l.b16 %v66_v45 }
  0xa1   :  { %v88_v48 = vrot.slane %v78_v46, %v83_v43 }
  0xa3   :  { %v90_v49 = vsel %vm89_vm3, %v88_v48, %v84_v47 }
  0xa4   :  { %v91_v51 = vpack.c.b16 %v90_v49, %v90_v49  ;;  %v2319_v49 = vld [vmem:[%s2916_s5 + $0x18] sm:$0xff]  }
  0xa5   :  { %2224 = vmatprep.subr.bf16.mxu1 %v2319_v49 }
  0xa6   :  { %2191 = vmatmul.mubr.msk.bf16.vlgmr.msra.gmra.mrb[0].mxu0 %vm92_vm4, %v91_v51  ;;  %2225 = vmatpush3.bf16.msra.mxu1 %v2319_v49 }
  0xa7   :  { %2195 = vmatpush3.bf16.msra.mxu0 %v2292_v22  ;;  %2210 = vmatprep.mubr.bf16.mxu0 %v2314_v50  ;;  %v1977_v50 = vld [vmem:[%s2918_s7] ss:$0 sm:$0xff] }
  0xa8   :  { %2196 = vmatprep.subr.bf16.mxu0 %v2295_v52 }
  0xab   :  { %2197 = vmatpush3.bf16.msra.mxu0 %v2295_v52 }
  0xac   :  { %2198 = vmatprep.subr.bf16.mxu0 %v2298_v53 }
  0xaf   :  { %2199 = vmatpush3.bf16.msra.mxu0 %v2298_v53 }
  0xb0   :  { %2200 = vmatprep.subr.bf16.mxu0 %v2301_v54 }
  0xb3   :  { %2201 = vmatpush3.bf16.msra.mxu0 %v2301_v54 }
  0xb4   :  { %2202 = vmatprep.subr.bf16.mxu0 %v2304_v55 }
  0xb7   :  { %2203 = vmatpush3.bf16.msra.mxu0 %v2304_v55 }
  0xb8   :  { %2204 = vmatprep.subr.bf16.mxu0 %v2308_v56 }
  0xbb   :  { %2205 = vmatpush3.bf16.msra.mxu0 %v2308_v56 }
  0xbc   :  { %2206 = vmatprep.subr.bf16.mxu0 %v2309_v57 }
  0xbf   :  { %2207 = vmatpush3.bf16.msra.mxu0 %v2309_v57 }
  0xc0   :  { %2208 = vmatprep.subr.bf16.mxu0 %v2313_v58 }
  0xc3   :  { %2209 = vmatpush3.bf16.msra.mxu0 %v2313_v58 }
  0xc4   :  { %2214 = vmatprep.subr.bf16.mxu0 %v2316_v8 }
  0xc6   :  { %2211 = vmatmul.mubr.bf16.vlgmr.msra.gmra.mrb[4].mxu0 %v2315_v59 }
  0xc7   :  { %2215 = vmatpush3.bf16.msra.mxu0 %v2316_v8 }
  0xc8   :  { %2216 = vmatprep.subr.bf16.mxu0 %v2317_v9 }
  0xcb   :  { %2217 = vmatpush3.bf16.msra.mxu0 %v2317_v9 }
  0xf6   :  { %v2136_v60 = vpop.f32.mrb[0].mxu1 }
  0xf7   :  { %v2137_v61 = vpop.f32.mrb[1].mxu1 }
  0xf8   :  { %v2138_v62 = vadd.f32 %v2137_v61, %v2136_v60  ;;  %v2139_v63 = vpop.f32.mrb[2].mxu1 }
  0xf9   :  { %v2140_v0 = vpop.f32.mrb[3].mxu1 }
  0xfa   :  { %v2141_v1 = vadd.f32 %v2140_v0, %v2139_v63  ;;  %v423_v24 = vadd.f32 %v2138_v62, %v1946_v16 }
  0xfc   :  { %v426_v31 = vadd.f32 %v2141_v1, %v1946_v16  ;;  %v2320_v1 = vld [vmem:[%s2916_s5 + $0x20] sm:$0xff]  }
  0xfd   :  { %2230 = vmatprep.subr.bf16.mxu0 %v2320_v1 }
  0xfe   :  { %v2142_v2 = vpop.f32.mrb[4].mxu1 }
  0xff   :  { %v2143_v3 = vpop.f32.mrb[5].mxu1 }
 0x100   :  { %v2144_v4 = vadd.f32 %v2143_v3, %v2142_v2  ;;  %v2145_v5 = vpop.f32.mrb[6].mxu1  ;;  %v2321_v2 = vld [vmem:[%s2916_s5 + $0x28] sm:$0xff]   ;;  %v1987_v3 = vld [vmem:[%s2918_s7 + $0x1] ss:$0 sm:$0xff] }
 0x101   :  { %v2146_v6 = vpop.f32.mrb[7].mxu1 }
 0x102   :  { %v2147_v7 = vadd.f32 %v2146_v6, %v2145_v5  ;;  %v431_v17 = vadd.f32 %v2144_v4, %v1946_v16 }
 0x104   :  { %v434_v20 = vadd.f32 %v2147_v7, %v1946_v16 }
 0x179   :  { %v134_v11 = vpop.f32.mrb[0].mxu0 }
 0x17a   :  { %v2192_v12 = vpop.f32.mrb[1].mxu0  ;;  %v135_v18 = vadd.f32 %v1943_v15, %v134_v11 }
 0x17b   :  { %v137_v13 = vpop.f32.mrb[2].mxu0 }
 0x17c   :  { %v2193_v14 = vpop.f32.mrb[3].mxu0  ;;  %v147_v32 = vrot.slane %v135_v18, %v146_v19  ;;  %v143_v37 = vrot.slane %v135_v18, %v142_v21  ;;  %v2322_v18 = vld [vmem:[%s2916_s5 + $0x60] sm:$0xff]   ;;  %v2323_v19 = vld [vmem:[%s2916_s5 + $0x68] sm:$0xff]  }
 0x17d   :  { %2238 = vmatprep.subr.bf16.mxu1 %v2322_v18 }
 0x199   :  { %v2212_v22 = vpop.f32.mrb[4].mxu0 }
 0x19a   :  { %v480_v25 = vadd.f32 %v2212_v22, %v431_v17  ;;  %v471_v26 = vpop.f32.mrb[5].mxu0 }
 0x19b   :  { %v472_v28 = vadd.f32 %v471_v26, %v423_v24  ;;  %v2213_v29 = vpop.f32.mrb[6].mxu0 }
 0x19c   :  { %v492_v33 = vadd.f32 %v488_v23, %v480_v25  ;;  %v483_v34 = vadd.f32 %v2213_v29, %v434_v20  ;;  %v474_v35 = vpop.f32.mrb[7].mxu0  ;;  %v1997_v20 = vld [vmem:[%s2918_s7 + $0x2] ss:$0 sm:$0xff] }
 0x19d   :  { %v490_v39 = vadd.f32 %v486_v27, %v472_v28  ;;  %v475_v40 = vadd.f32 %v474_v35, %v426_v31  ;;  %v2324_v35 = vld [vmem:[%s2916_s5 + $0x70] sm:$0xff]  }
 0x19e   :  { %v496_v41 = vadd.f32 %v492_v33, %v147_v32  ;;  %v493_v42 = vadd.f32 %v489_v30, %v483_v34 }
 0x19f   :  { %v494_v43 = vadd.f32 %v490_v39, %v143_v37  ;;  %v491_v44 = vadd.f32 %v487_v36, %v475_v40  ;;  %v2325_v36 = vld [vmem:[%s2916_s5 + $0x78] sm:$0xff]   ;;  %v2410_v39 = vmov 0   ;;  %v1150_v40 = vld [vmem:[%s2919_s8] sm:$0xff] }
 0x1a0   :  { %v497_v45 = vadd.f32 %v493_v42, %v147_v32  ;;  %2282 = vset.pattern.permute.xlu1 %v2410_v39  ;;  %2283 = vset.pattern.permute.xlu0 %v2410_v39  ;;  %v2667_v42 = vld [vmem:[%s2919_s8 + $0x8] sm:$0xff] }
 0x1a1   :  { %v495_v46 = vadd.f32 %v491_v44, %v143_v37  ;;  %v2326_v37 = vld [vmem:[%s2916_s5 + $0x40] sm:$0xff]   ;;  %1156 = vperm.xlu1 %2282, %v1150_v40  }
 0x1a2   :  { %v503_v47 = vpack.c.bf16 %v497_v45, %v496_v41  ;;  %v1152_v41 = vld [vmem:[%s2919_s8 + $0x10] sm:$0xff]  ;;  %v2679_v44 = vld [vmem:[%s2919_s8 + $0x20] sm:$0xff] }
 0x1a3   :  { %v502_v48 = vpack.c.bf16 %v495_v46, %v494_v43  ;;  %1166 = vperm.xlu0 %2283, %v1152_v41   ;;  %v2673_v43 = vld [vmem:[%s2919_s8 + $0x18] sm:$0xff]  ;;  %v2685_v45 = vld [vmem:[%s2919_s8 + $0x30] sm:$0xff]  ;;  %v2691_v46 = vld [vmem:[%s2919_s8 + $0x40] sm:$0xff] }
 0x1a5   :  { %2218 = vmatprep.mubr.msk.bf16.mxu0 %vm523_vm5, %v502_v48  ;;  %1161 = vperm.xlu1 %2282, %v2667_v42  }
 0x1a6   :  { %2219 = vmatmul.mubr.msk.bf16.vlgmr.msra.gmra.mrb[8].mxu0 %vm523_vm5, %v503_v47  ;;  %v2007_v47 = vld [vmem:[%s2918_s7 + $0x5] ss:$0 sm:$0xff] }
 0x1a7   :  { %2231 = vmatpush3.bf16.msra.mxu0 %v2320_v1  ;;  %1541 = vperm.xlu0 %2283, %v1150_v40  }
 0x1a8   :  { %2232 = vmatprep.subr.bf16.mxu0 %v2321_v2 }
 0x1a9   :  { %1171 = vperm.xlu1 %2282, %v2673_v43  }
 0x1ab   :  { %2233 = vmatpush3.bf16.msra.mxu0 %v2321_v2  ;;  %1551 = vperm.xlu0 %2283, %v1152_v41   ;;  %v2328_v2 = vld [vmem:[%s2914_s3] sm:$0xff]  }
 0x1ac   :  { %2246 = vmatprep.subr.bf16.mxu0 %v2324_v35 }
 0x1af   :  { %1657 = vperm.xlu0 %2283, %v2679_v44  }
 0x1b3   :  { %1667 = vperm.xlu0 %2283, %v2685_v45  }
 0x1b7   :  { %1758 = vperm.xlu0 %2283, %v2691_v46  }
 0x279   :  { %v2220_v51 = vpop.f32.mrb[8].mxu0 }
 0x27a   :  { %v573_v52 = vadd.f32 %v2220_v51, %v1977_v50  ;;  %v564_v53 = vpop.f32.mrb[9].mxu0 }
 0x27b   :  { %v565_v54 = vadd.f32 %v1977_v50, %v564_v53  ;;  %v2221_v55 = vpop.f32.mrb[10].mxu0 }
 0x27c   :  { %v576_v56 = vadd.f32 %v2221_v55, %v1977_v50  ;;  %v567_v57 = vpop.f32.mrb[11].mxu0  ;;  %v581_v59 = vmax.f32 %v573_v52, 0.0 }
 0x27d   :  { %v568_v58 = vadd.f32 %v1977_v50, %v567_v57  ;;  %v579_v61 = vmax.f32 %v565_v54, 0.0 }
 0x27e   :  { %v582_v60 = vmax.f32 %v576_v56, 0.0 }
 0x27f   :  { %v580_v62 = vmax.f32 %v568_v58, 0.0 }
 0x280   :  { %v589_v63 = vpack.c.bf16 %v582_v60, %v581_v59 }
 0x281   :  { %v588_v0 = vpack.c.bf16 %v580_v62, %v579_v61  ;;  %v2327_v62 = vld [vmem:[%s2916_s5 + $0x48] sm:$0xff]  }
 0x283   :  { %2226 = vmatprep.mubr.msk.bf16.mxu1 %vm523_vm5, %v588_v0 }
 0x284   :  { %2227 = vmatmul.mubr.msk.bf16.vlgmr.msra.gmra.mrb[8].mxu1 %vm523_vm5, %v589_v63  ;;  %v2045_v63 = vld.sshfl [vmem:[%s2911_s0] sm:$0x33 pattern:$0x76325410] }
 0x285   :  { %2239 = vmatpush3.bf16.msra.mxu1 %v2322_v18  ;;  %v1192_v0 = vcombine.high %v2045_v63, %v2045_v63  ;;  %v1200_v1 = vsel %vm96_vm1, %v2045_v63, 0  ;;  %v2056_v63 = vld [vmem:[%s2919_s8 + $0x38] sm:$0xff] }
 0x286   :  { %2240 = vmatprep.subr.bf16.mxu1 %v2323_v19 }
 0x289   :  { %2241 = vmatpush3.bf16.msra.mxu1 %v2323_v19 }
 0x357   :  { %v2228_v4 = vpop.f32.mrb[8].mxu1 }
 0x358   :  { %v659_v5 = vadd.f32 %v2228_v4, %v1987_v3  ;;  %v650_v6 = vpop.f32.mrb[9].mxu1  ;;  %v2725_v4 = vld [vmem:[%s2919_s8 + $0x50] sm:$0xff] }
 0x359   :  { %v651_v7 = vadd.f32 %v1987_v3, %v650_v6  ;;  %v2229_v8 = vpop.f32.mrb[10].mxu1  ;;  %1768 = vperm.xlu0 %2283, %v2725_v4   ;;  %v2331_v6 = vld [vmem:[%s2917_s6 + $0x8] sm:$0xff]  }
 0x35a   :  { %v662_v9 = vadd.f32 %v2229_v8, %v1987_v3  ;;  %v653_v10 = vpop.f32.mrb[11].mxu1  ;;  %v667_v12 = vmax.f32 %v659_v5, 0.0  ;;  %v2330_v5 = vld [vmem:[%s2917_s6] sm:$0xff]   ;;  %v2333_v8 = vld [vmem:[%s2917_s6 + $0x18] sm:$0xff]  }
 0x35b   :  { %v654_v11 = vadd.f32 %v1987_v3, %v653_v10  ;;  %v665_v14 = vmax.f32 %v651_v7, 0.0  ;;  %v2329_v3 = vld [vmem:[%s2914_s3 + $0x8] sm:$0xff]   ;;  %2254 = vmatprep.subr.bf16.mxu1 %v2330_v5  ;;  %v2332_v7 = vld [vmem:[%s2917_s6 + $0x10] sm:$0xff]  }
 0x35c   :  { %v668_v13 = vmax.f32 %v662_v9, 0.0  ;;  %v2017_v9 = vld [vmem:[%s2918_s7 + $0x6] ss:$0 sm:$0xff] }
 0x35d   :  { %v666_v15 = vmax.f32 %v654_v11, 0.0 }
 0x35e   :  { %v675_v16 = vpack.c.bf16 %v668_v13, %v667_v12 }
 0x35f   :  { %v674_v17 = vpack.c.bf16 %v666_v15, %v665_v14 }
 0x361   :  { %2234 = vmatprep.mubr.msk.bf16.mxu0 %vm523_vm5, %v674_v17 }
 0x362   :  { %2235 = vmatmul.mubr.msk.bf16.vlgmr.msra.gmra.mrb[12].mxu0 %vm523_vm5, %v675_v16 }
 0x363   :  { %2247 = vmatpush3.bf16.msra.mxu0 %v2324_v35  ;;  %v1157_v35 = vpop.permute.xlu1 %1156 }
 0x364   :  { %2248 = vmatprep.subr.bf16.mxu0 %v2325_v36 }
 0x367   :  { %2249 = vmatpush3.bf16.msra.mxu0 %v2325_v36 }
 0x368   :  { %2266 = vmatprep.subr.bf16.mxu0 %v2326_v37 }
 0x435   :  { %v2236_v21 = vpop.f32.mrb[12].mxu0 }
 0x436   :  { %v745_v22 = vadd.f32 %v2236_v21, %v1997_v20  ;;  %v736_v23 = vpop.f32.mrb[13].mxu0 }
 0x437   :  { %v737_v24 = vadd.f32 %v1997_v20, %v736_v23  ;;  %v2237_v25 = vpop.f32.mrb[14].mxu0 }
 0x438   :  { %v748_v26 = vadd.f32 %v2237_v25, %v1997_v20  ;;  %v739_v27 = vpop.f32.mrb[15].mxu0  ;;  %v753_v29 = vmax.f32 %v745_v22, 0.0  ;;  %v2038_v22 = vld [vmem:[%s2918_s7 + $0x4] ss:$0 sm:$0xff] }
 0x439   :  { %v740_v28 = vadd.f32 %v1997_v20, %v739_v27  ;;  %v751_v31 = vmax.f32 %v737_v24, 0.0 }
 0x43a   :  { %v754_v30 = vmax.f32 %v748_v26, 0.0 }
 0x43b   :  { %v752_v32 = vmax.f32 %v740_v28, 0.0 }
 0x43c   :  { %v2639_v33 = vpack.c.bf16 %v754_v30, %v753_v29 }
 0x43d   :  { %v2641_v34 = vpack.c.bf16 %v752_v32, %v751_v31 }
 0x43f   :  { %2242 = vmatprep.mubr.msk.bf16.mxu1 %vm523_vm5, %v2641_v34 }
 0x440   :  { %2243 = vmatmul.mubr.msk.bf16.vlgmr.msra.gmra.mrb[12].mxu1 %vm523_vm5, %v2639_v33 }
 0x441   :  { %2255 = vmatpush3.bf16.msra.mxu1 %v2330_v5 }
 0x442   :  { %2256 = vmatprep.subr.bf16.mxu1 %v2331_v6 }
 0x445   :  { %2257 = vmatpush3.bf16.msra.mxu1 %v2331_v6  ;;  %v2066_v6 = vld [vmem:[%s2919_s8 + $0x48] sm:$0xff] }
 0x446   :  { %2258 = vmatprep.subr.bf16.mxu1 %v2332_v7 }
 0x449   :  { %2259 = vmatpush3.bf16.msra.mxu1 %v2332_v7 }
 0x44a   :  { %2260 = vmatprep.subr.bf16.mxu1 %v2333_v8 }
 0x44d   :  { %2261 = vmatpush3.bf16.msra.mxu1 %v2333_v8 }
 0x513   :  { %v2244_v48 = vpop.f32.mrb[12].mxu1 }
 0x514   :  { %v831_v49 = vadd.f32 %v2244_v48, %v2007_v47  ;;  %v822_v50 = vpop.f32.mrb[13].mxu1 }
 0x515   :  { %v823_v51 = vadd.f32 %v2007_v47, %v822_v50  ;;  %v2245_v52 = vpop.f32.mrb[14].mxu1  ;;  %v1162_v50 = vpop.permute.xlu1 %1161 }
 0x516   :  { %v834_v53 = vadd.f32 %v2245_v52, %v2007_v47  ;;  %v825_v54 = vpop.f32.mrb[15].mxu1  ;;  %v839_v56 = vmax.f32 %v831_v49, 0.0 }
 0x517   :  { %v826_v55 = vadd.f32 %v2007_v47, %v825_v54  ;;  %v837_v58 = vmax.f32 %v823_v51, 0.0  ;;  %v2054_v51 = vld [vmem:[%s2919_s8 + $0x28] sm:$0xff] }
 0x518   :  { %v840_v57 = vmax.f32 %v834_v53, 0.0 }
 0x519   :  { %v838_v59 = vmax.f32 %v826_v55, 0.0 }
 0x51a   :  { %v847_v60 = vpack.c.bf16 %v840_v57, %v839_v56  ;;  %v1167_v57 = vpop.permute.xlu0 %1166 }
 0x51b   :  { %v846_v61 = vpack.c.bf16 %v838_v59, %v837_v58  ;;  %v1172_v59 = vpop.permute.xlu1 %1171 }
 0x51d   :  { %2250 = vmatprep.mubr.msk.bf16.mxu0 %vm523_vm5, %v846_v61 }
 0x51e   :  { %2251 = vmatmul.mubr.msk.bf16.vlgmr.msra.gmra.mrb[16].mxu0 %vm523_vm5, %v847_v60 }
 0x51f   :  { %2267 = vmatpush3.bf16.msra.mxu0 %v2326_v37  ;;  %2270 = vmatprep.mubr.msk.bf16.mxu0 %vm523_vm5, %v2641_v34 }
 0x520   :  { %2268 = vmatprep.subr.bf16.mxu0 %v2327_v62 }
 0x523   :  { %2269 = vmatpush3.bf16.msra.mxu0 %v2327_v62 }
 0x524   :  { %2046 = vmatprep.subr.msk.bf16.mxu0 %vm96_vm1, %v1192_v0 }
 0x526   :  { %2271 = vmatmul.mubr.msk.bf16.vlgmr.msra.gmra.mrb[20].mxu0 %vm523_vm5, %v2639_v33 }
 0x527   :  { %1206 = vmatpush1.bf16.msra.mxu0 %v1200_v1  ;;  %1237 = vmatprep.mubr.bf16.mxu0 %v2410_v39 }
 0x52e   :  { %2047 = vmatmul.mubr.msk.bf16.vlgmr.msra.gmra.mrb[24].mxu0 %vm92_vm4, %v2328_v2 }
 0x52f   :  { %1247 = vmatprep.mubr.bf16.mxu0 %v2410_v39 }
 0x536   :  { %2048 = vmatmul.mubr.msk.bf16.gmra.mrb[28].mxu0 %vm92_vm4, %v2329_v3 }
 0x537   :  { %1443 = vmatprep.mubr.bf16.mxu0 %v2410_v39 }
 0x5f1   :  { %v2252_v10 = vpop.f32.mrb[16].mxu0 }
 0x5f2   :  { %v917_v11 = vadd.f32 %v2252_v10, %v2017_v9  ;;  %v908_v12 = vpop.f32.mrb[17].mxu0 }
 0x5f3   :  { %v909_v13 = vadd.f32 %v2017_v9, %v908_v12  ;;  %v2253_v14 = vpop.f32.mrb[18].mxu0 }
 0x5f4   :  { %v920_v15 = vadd.f32 %v2253_v14, %v2017_v9  ;;  %v911_v16 = vpop.f32.mrb[19].mxu0  ;;  %v925_v18 = vmax.f32 %v917_v11, 0.0 }
 0x5f5   :  { %v912_v17 = vadd.f32 %v2017_v9, %v911_v16  ;;  %v923_v20 = vmax.f32 %v909_v13, 0.0 }
 0x5f6   :  { %v926_v19 = vmax.f32 %v920_v15, 0.0 }
 0x5f7   :  { %v924_v21 = vmax.f32 %v912_v17, 0.0 }
 0x5f8   :  { %v928_v23 = vpack.c.bf16 %v926_v19, %v925_v18 }
 0x5f9   :  { %v927_v24 = vpack.c.bf16 %v924_v21, %v923_v20  ;;  %v2272_v25 = vpop.f32.mrb[20].mxu0 }
 0x5fa   :  { %v2746_v26 = vadd.f32 %v2272_v25, %v2038_v22  ;;  %v1130_v27 = vpop.f32.mrb[21].mxu0 }
 0x5fb   :  { %v2273_v28 = vpop.f32.mrb[22].mxu0  ;;  %931 = vrot.lane.b32.xlu1 %v927_v24, %s2411_s14  ;;  %v2750_v31 = vadd.f32 %v2038_v22, %v1130_v27 }
 0x5fc   :  { %v2748_v29 = vadd.f32 %v2273_v28, %v2038_v22  ;;  %v1133_v30 = vpop.f32.mrb[23].mxu0 }
 0x5fd   :  { %v2752_v32 = vadd.f32 %v2038_v22, %v1133_v30 }
 0x5fe   :  { %v1849_v36 = vpack.c.bf16 %v2748_v29, %v2746_v26 }
 0x5ff   :  { %v1468_v37 = vpack.c.bf16 %v2752_v32, %v2750_v31  ;;  %933 = vrot.lane.b32.xlu1 %v928_v23, %s2411_s14 }
 0x601   :  { %v1239_v40 = vpop.f32.mrb[24].mxu0 }
 0x602   :  { %v1240_v41 = vadd.f32 %v1239_v40, %v1157_v35  ;;  %v1241_v47 = vpop.f32.mrb[25].mxu0 }
 0x603   :  { %1274 = vperm.xlu1 %2282, %v2679_v44   ;;  %v1242_v48 = vadd.f32 %v1241_v47, %v1157_v35  ;;  %v1243_v49 = vpop.f32.mrb[26].mxu0 }
 0x604   :  { %v1244_v52 = vadd.f32 %v1243_v49, %v1162_v50  ;;  %v1245_v53 = vpop.f32.mrb[27].mxu0 }
 0x605   :  { %v1246_v54 = vadd.f32 %v1245_v53, %v1162_v50 }
 0x606   :  { %v1258_v55 = vpack.c.bf16 %v1244_v52, %v1240_v41 }
 0x607   :  { %1279 = vperm.xlu1 %2282, %v2054_v51   ;;  %v1259_v56 = vpack.c.bf16 %v1246_v54, %v1242_v48 }
 0x609   :  { %v1249_v58 = vpop.f32.mrb[28].mxu0  ;;  %1308 = vmatprep.subr.bf16.mxu1 %v1259_v56 }
 0x60a   :  { %v1250_v60 = vadd.f32 %v1249_v58, %v1167_v57  ;;  %v1251_v61 = vpop.f32.mrb[29].mxu0 }
 0x60b   :  { %1284 = vperm.xlu1 %2282, %v2685_v45   ;;  %v1252_v44 = vadd.f32 %v1251_v61, %v1167_v57  ;;  %v1253_v62 = vpop.f32.mrb[30].mxu0  ;;  %v2068_v45 = vld [vmem:[%s2919_s8 + $0x58] sm:$0xff] }
 0x60c   :  { %v1254_v0 = vadd.f32 %v1253_v62, %v1172_v59  ;;  %v1255_v1 = vpop.f32.mrb[31].mxu0 }
 0x60d   :  { %v1256_v2 = vadd.f32 %v1255_v1, %v1172_v59 }
 0x60e   :  { %v1260_v3 = vpack.c.bf16 %v1254_v0, %v1250_v60 }
 0x60f   :  { %1289 = vperm.xlu1 %2282, %v2056_v63   ;;  %v1261_v5 = vpack.c.bf16 %v1256_v2, %v1252_v44  ;;  %v2336_v2 = vld [vmem:[%s2916_s5 + $0x50] sm:$0xff]  }
 0x613   :  { %1377 = vperm.xlu1 %2282, %v2691_v46  }
 0x617   :  { %1382 = vperm.xlu1 %2282, %v2066_v6  }
 0x61b   :  { %1387 = vperm.xlu1 %2282, %v2725_v4  }
 0x61f   :  { %1392 = vperm.xlu1 %2282, %v2068_v45  }
 0x623   :  { %1546 = vperm.xlu1 %2282, %v2667_v42   ;;  %v2334_v42 = vld [vmem:[%s2916_s5 + $0x30] sm:$0xff]  }
 0x627   :  { %1556 = vperm.xlu1 %2282, %v2673_v43  }
 0x62b   :  { %1662 = vperm.xlu1 %2282, %v2054_v51  }
 0x62f   :  { %1672 = vperm.xlu1 %2282, %v2056_v63  }
 0x633   :  { %1763 = vperm.xlu1 %2282, %v2066_v6  }
 0x637   :  { %1773 = vperm.xlu1 %2282, %v2068_v45  }
 0x66d   :  { %v932_v46 = vpop.permute.xlu1 %931 }
 0x66e   :  { %v936_v7 = vsel %vm523_vm5, %v2641_v34, %v932_v46  ;;  %v2335_v34 = vld [vmem:[%s2916_s5 + $0x38] sm:$0xff]  }
 0x66f   :  { %2262 = vmatprep.mubr.msk.bf16.mxu1 %vm978_vm6, %v936_v7 }
 0x671   :  { %v934_v4 = vpop.permute.xlu1 %933 }
 0x672   :  { %v938_v8 = vsel %vm523_vm5, %v2639_v33, %v934_v4  ;;  %v2022_v33 = vld [vmem:[%s2920_s9] ss:$0 sm:$0xff] }
 0x673   :  { %2263 = vmatmul.mubr.msk.bf16.vlgmr.msra.gmra.mrb[16].mxu1 %vm978_vm6, %v938_v8 }
 0x674   :  { %1309 = vmatpush1.bf16.msra.mxu1 %v1258_v55  ;;  %1340 = vmatprep.mubr.bf16.mxu1 %v2410_v39 }
 0x675   :  { %1310 = vmatprep.subr.bf16.mxu1 %v1261_v5 }
 0x678   :  { %1311 = vmatpush1.bf16.msra.mxu1 %v1260_v3 }
 0x67b   :  { %2059 = vmatmul.mubr.msk.bf16.vlgmr.msra.gmra.mrb[20].mxu1 %vm523_vm5, %v2334_v42 }
 0x67c   :  { %1350 = vmatprep.mubr.bf16.mxu1 %v2410_v39 }
 0x682   :  { %v1275_v43 = vpop.permute.xlu1 %1274 }
 0x683   :  { %2060 = vmatmul.mubr.msk.bf16.gmra.mrb[24].mxu1 %vm523_vm5, %v2335_v34 }
 0x684   :  { %1504 = vmatprep.mubr.bf16.mxu1 %v2410_v39 }
 0x686   :  { %v1280_v20 = vpop.permute.xlu1 %1279 }
 0x68a   :  { %v1285_v30 = vpop.permute.xlu1 %1284 }
 0x68e   :  { %v1290_v56 = vpop.permute.xlu1 %1289 }
 0x746   :  { %v2264_v9 = vpop.f32.mrb[16].mxu1 }
 0x747   :  { %v2794_v10 = vadd.f32 %v2264_v9, %v2022_v33  ;;  %v1017_v11 = vpop.f32.mrb[17].mxu1  ;;  %v2337_v9 = vld [vmem:[%s2916_s5 + $0x58] sm:$0xff]  }
 0x748   :  { %v2796_v12 = vadd.f32 %v2022_v33, %v1017_v11  ;;  %v2265_v13 = vpop.f32.mrb[18].mxu1  ;;  %v1378_v11 = vpop.permute.xlu1 %1377 }
 0x749   :  { %v2031_v14 = vmul.f32 -1.442695, %v2794_v10  ;;  %v2799_v15 = vadd.f32 %v2265_v13, %v2022_v33  ;;  %v1020_v16 = vpop.f32.mrb[19].mxu1 }
 0x74a   :  { %v2029_v17 = vmul.f32 -1.442695, %v2796_v12  ;;  %v2802_v18 = vadd.f32 %v2022_v33, %v1020_v16 }
 0x74b   :  { %2344 = vpow2.f32 %v2031_v14  ;;  %v2032_v19 = vmul.f32 -1.442695, %v2799_v15 }
 0x74c   :  { %2346 = vpow2.f32 %v2029_v17  ;;  %v2030_v21 = vmul.f32 -1.442695, %v2802_v18 }
 0x74d   :  { %2348 = vpow2.f32 %v2032_v19 }
 0x74e   :  { %2350 = vpow2.f32 %v2030_v21  ;;  %v1342_v22 = vpop.f32.mrb[20].mxu1 }
 0x74f   :  { %v1344_v23 = vpop.f32.mrb[21].mxu1  ;;  %v1343_v25 = vadd.f32 %v1342_v22, %v1275_v43 }
 0x750   :  { %v1346_v24 = vpop.f32.mrb[22].mxu1  ;;  %v1345_v35 = vadd.f32 %v1344_v23, %v1275_v43 }
 0x751   :  { %v1347_v27 = vadd.f32 %v1346_v24, %v1280_v20  ;;  %v1348_v28 = vpop.f32.mrb[23].mxu1 }
 0x752   :  { %v1349_v40 = vadd.f32 %v1348_v28, %v1280_v20 }
 0x753   :  { %v1361_v41 = vpack.c.bf16 %v1347_v27, %v1343_v25 }
 0x754   :  { %v1362_v47 = vpack.c.bf16 %v1349_v40, %v1345_v35  ;;  %v2079_v40 = vld.sshfl [vmem:[%s2911_s0 + $0x4] sm:$0x33 pattern:$0x76325410] }
 0x755   :  { %v2345_v48 = vpop.eup %2344 }
 0x756   :  { %v2347_v49 = vpop.eup %2346  ;;  %v1049_v50 = vadd.f32 1.0, %v2345_v48  ;;  %v1352_v51 = vpop.f32.mrb[24].mxu1  ;;  %1411 = vmatprep.subr.bf16.mxu0 %v1362_v47 }
 0x757   :  { %v2349_v52 = vpop.eup %2348  ;;  %v1047_v53 = vadd.f32 1.0, %v2347_v49  ;;  %v1354_v54 = vpop.f32.mrb[25].mxu1  ;;  %1412 = vmatpush1.bf16.msra.mxu0 %v1361_v41  ;;  %v1353_v60 = vadd.f32 %v1352_v51, %v1285_v30  ;;  %v1585_v51 = vsel %vm96_vm1, %v2079_v40, 0 }
 0x758   :  { %v2351_v55 = vpop.eup %2350  ;;  %2352 = vrcp.f32 %v1049_v50  ;;  %v1050_v57 = vadd.f32 1.0, %v2349_v52  ;;  %v1356_v58 = vpop.f32.mrb[26].mxu1  ;;  %v1355_v62 = vadd.f32 %v1354_v54, %v1285_v30  ;;  %v1577_v50 = vcombine.high %v2079_v40, %v2079_v40  ;;  %v2338_v52 = vld [vmem:[%s2914_s3] sm:$0xff]  }
 0x759   :  { %2354 = vrcp.f32 %v1047_v53  ;;  %v1048_v59 = vadd.f32 1.0, %v2351_v55  ;;  %v1357_v61 = vadd.f32 %v1356_v58, %v1290_v56  ;;  %v1358_v44 = vpop.f32.mrb[27].mxu1  ;;  %v2339_v53 = vld [vmem:[%s2914_s3 + $0x8] sm:$0xff]   ;;  %v1542_v58 = vpop.permute.xlu0 %1541 }
 0x75a   :  { %2356 = vrcp.f32 %v1050_v57  ;;  %v1359_v63 = vadd.f32 %v1358_v44, %v1290_v56 }
 0x75b   :  { %2358 = vrcp.f32 %v1048_v59  ;;  %v1363_v0 = vpack.c.bf16 %v1357_v61, %v1353_v60 }
 0x75c   :  { %v1364_v1 = vpack.c.bf16 %v1359_v63, %v1355_v62 }
 0x75e   :  { %1413 = vmatprep.subr.bf16.mxu0 %v1364_v1 }
 0x75f   :  { %1414 = vmatpush1.bf16.msra.mxu0 %v1363_v0 }
 0x762   :  { %v2353_v5 = vpop.eup %2352  ;;  %2071 = vmatmul.mubr.msk.bf16.vlgmr.msra.gmra.mrb[32].mxu0 %vm523_vm5, %v2336_v2 }
 0x763   :  { %v2355_v6 = vpop.eup %2354  ;;  %v1061_v45 = vsel %vm2813_vm9, %v2353_v5, %v2794_v10  ;;  %1453 = vmatprep.mubr.bf16.mxu0 %v2410_v39 }
 0x764   :  { %v2357_v46 = vpop.eup %2356  ;;  %v1065_v7 = vsel %vm1033_vm8, %v1061_v45, 0.0  ;;  %v1059_v4 = vsel %vm2813_vm9, %v2355_v6, %v2796_v12  ;;  %v1383_v12 = vpop.permute.xlu1 %1382 }
 0x765   :  { %v2359_v8 = vpop.eup %2358  ;;  %1069 = vst [vmem:[#allocation2 + $0x10] sm:$0xff] %v1065_v7  ;;  %v1063_v42 = vsel %vm1033_vm8, %v1059_v4, 0.0  ;;  %v1062_v34 = vsel %vm2813_vm9, %v2357_v46, %v2799_v15  ;;  %v1552_v6 = vpop.permute.xlu0 %1551 }
 0x766   :  { %1067 = vst [vmem:[#allocation2] sm:$0xff] %v1063_v42  ;;  %v1066_v33 = vsel %vm1033_vm8, %v1062_v34, 0.0  ;;  %v1060_v43 = vsel %vm2813_vm9, %v2359_v8, %v2802_v18 }
 0x767   :  { %1070 = vst [vmem:[#allocation2 + $0x18] sm:$0xff] %v1066_v33  ;;  %v1064_v10 = vsel %vm1033_vm8, %v1060_v43, 0.0 }
 0x768   :  { %1068 = vst [vmem:[#allocation2 + $0x8] sm:$0xff] %v1064_v10  ;;  %v1388_v19 = vpop.permute.xlu1 %1387  ;;  %v2340_v10 = vld [vmem:[%s2916_s5 + $0x30] sm:$0xff]  }
 0x76a   :  { %2072 = vmatmul.mubr.msk.bf16.gmra.mrb[36].mxu0 %vm523_vm5, %v2337_v9 }
 0x76b   :  { %1723 = vmatprep.mubr.bf16.mxu0 %v2410_v39 }
 0x76c   :  { %v1393_v25 = vpop.permute.xlu1 %1392 }
 0x770   :  { %v1547_v60 = vpop.permute.xlu1 %1546 }
 0x774   :  { %v1557_v46 = vpop.permute.xlu1 %1556 }
 0x835   :  { %v1445_v13 = vpop.f32.mrb[32].mxu0 }
 0x836   :  { %v1447_v14 = vpop.f32.mrb[33].mxu0  ;;  %v1446_v16 = vadd.f32 %v1445_v13, %v1378_v11  ;;  %v1658_v13 = vpop.permute.xlu0 %1657 }
 0x837   :  { %v1449_v15 = vpop.f32.mrb[34].mxu0  ;;  %v1448_v20 = vadd.f32 %v1447_v14, %v1378_v11  ;;  %v2341_v11 = vld [vmem:[%s2916_s5 + $0x38] sm:$0xff]  }
 0x838   :  { %v1450_v17 = vadd.f32 %v1449_v15, %v1383_v12  ;;  %v1451_v18 = vpop.f32.mrb[35].mxu0  ;;  %v1663_v15 = vpop.permute.xlu1 %1662 }
 0x839   :  { %v1452_v21 = vadd.f32 %v1451_v18, %v1383_v12 }
 0x83a   :  { %v1464_v22 = vpack.c.bf16 %v1450_v17, %v1446_v16 }
 0x83b   :  { %v1465_v23 = vpack.c.bf16 %v1452_v21, %v1448_v20 }
 0x83d   :  { %v1455_v38 = vpop.f32.mrb[36].mxu0  ;;  %1472 = vmatprep.subr.bf16.mxu1 %v1465_v23 }
 0x83e   :  { %v1457_v24 = vpop.f32.mrb[37].mxu0  ;;  %1473 = vmatpush1.bf16.msra.mxu1 %v1464_v22  ;;  %v1456_v28 = vadd.f32 %v1455_v38, %v1388_v19 }
 0x83f   :  { %v1459_v27 = vpop.f32.mrb[38].mxu0  ;;  %v1458_v41 = vadd.f32 %v1457_v24, %v1388_v19  ;;  %v1668_v24 = vpop.permute.xlu0 %1667 }
 0x840   :  { %v1460_v30 = vadd.f32 %v1459_v27, %v1393_v25  ;;  %v1461_v35 = vpop.f32.mrb[39].mxu0  ;;  %v1673_v27 = vpop.permute.xlu1 %1672 }
 0x841   :  { %v1462_v47 = vadd.f32 %v1461_v35, %v1393_v25 }
 0x842   :  { %v1466_v48 = vpack.c.bf16 %v1460_v30, %v1456_v28 }
 0x843   :  { %v1467_v49 = vpack.c.bf16 %v1462_v47, %v1458_v41 }
 0x845   :  { %1474 = vmatprep.subr.bf16.mxu1 %v1467_v49 }
 0x846   :  { %1475 = vmatpush1.bf16.msra.mxu1 %v1466_v48 }
 0x847   :  { %2080 = vmatprep.subr.msk.bf16.mxu1 %vm96_vm1, %v1577_v50  ;;  %v2342_v50 = vld [vmem:[%s2916_s5 + $0x50] sm:$0xff]  }
 0x849   :  { %2073 = vmatmul.mubr.msk.bf16.vlgmr.msra.gmra.mrb[28].mxu1 %vm523_vm5, %v1468_v37 }
 0x84a   :  { %1591 = vmatpush1.bf16.msra.mxu1 %v1585_v51  ;;  %1622 = vmatprep.mubr.bf16.mxu1 %v2410_v39  ;;  %v2343_v51 = vld [vmem:[%s2916_s5 + $0x58] sm:$0xff]   ;;  %s2412_s5 = smov [#allocation2]  }
 0x84b   :  { %s1915_s18 = sshll.u32 %s2412_s5, 4  ;;  %s1916_s18 = int_to_ptr.vmem [resolvable:$true] %s1915_s18 }
 0x84c   :  { %s2360_s19 = scalar_lea.vmem %s1916_s18, 512  ;;  %p2365_p1 = scmp.lt.s32.totalorder %s1916_s18, %s1916_s18 }
 0x84d   :  { %p2361_p0 = scmp.ne.s32.totalorder %s1916_s18, %s2360_s19  ;;  %p2366_p2 = scmp.lt.s32.totalorder %s2360_s19, %s2360_s19 }
 0x84f   :  { %p2367_p3 = por %p2366_p2, %p2365_p1 }
 0x851   :  { %2081 = vmatmul.mubr.msk.bf16.vlgmr.msra.gmra.mrb[32].mxu1 %vm92_vm4, %v2338_v52  ;;  %p2368_p4 = pnand %p2367_p3, %p2361_p0 }
 0x852   :  { %1632 = vmatprep.mubr.bf16.mxu1 %v2410_v39 }
 0x859   :  { %2082 = vmatmul.mubr.msk.bf16.gmra.mrb[36].mxu1 %vm92_vm4, %v2339_v53  ;;  %v1759_v53 = vpop.permute.xlu0 %1758 }
 0x85a   :  { %1824 = vmatprep.mubr.bf16.mxu1 %v2410_v39 }
 0x91c   :  { %v1506_v31 = vpop.f32.mrb[28].mxu1 }
 0x91d   :  { %v1508_v32 = vpop.f32.mrb[29].mxu1 }
 0x91e   :  { %v2110_v37 = vpack.c.bf16 %v1508_v32, %v1506_v31  ;;  %v1510_v54 = vpop.f32.mrb[30].mxu1  ;;  %v1764_v32 = vpop.permute.xlu1 %1763 }
 0x91f   :  { %v1512_v55 = vpop.f32.mrb[31].mxu1 }
 0x920   :  { %1527 = vst [vmem:[#allocation4] sm:$0xff] %v2110_v37  ;;  %v2111_v56 = vpack.c.bf16 %v1512_v55, %v1510_v54 }
 0x922   :  { %1528 = vst [vmem:[#allocation4 + $0x8] sm:$0xff] %v2111_v56 }
 0x924   :  { %v1624_v57 = vpop.f32.mrb[32].mxu1 }
 0x925   :  { %v1626_v59 = vpop.f32.mrb[33].mxu1  ;;  %v1625_v44 = vadd.f32 %v1624_v57, %v1542_v58 }
 0x926   :  { %v1628_v61 = vpop.f32.mrb[34].mxu1  ;;  %v1627_v0 = vadd.f32 %v1626_v59, %v1542_v58 }
 0x927   :  { %v1629_v62 = vadd.f32 %v1628_v61, %v1547_v60  ;;  %v1630_v63 = vpop.f32.mrb[35].mxu1 }
 0x928   :  { %v1631_v1 = vadd.f32 %v1630_v63, %v1547_v60 }
 0x929   :  { %v1643_v2 = vpack.c.bf16 %v1629_v62, %v1625_v44  ;;  %v1774_v62 = vpop.permute.xlu1 %1773 }
 0x92a   :  { %v1644_v3 = vpack.c.bf16 %v1631_v1, %v1627_v0 }
 0x92c   :  { %v1634_v5 = vpop.f32.mrb[36].mxu1  ;;  %1691 = vmatprep.subr.bf16.mxu0 %v1644_v3 }
 0x92d   :  { %v1636_v45 = vpop.f32.mrb[37].mxu1  ;;  %1692 = vmatpush1.bf16.msra.mxu0 %v1643_v2  ;;  %v1635_v4 = vadd.f32 %v1634_v5, %v1552_v6 }
 0x92e   :  { %v1638_v7 = vpop.f32.mrb[38].mxu1  ;;  %v1637_v34 = vadd.f32 %v1636_v45, %v1552_v6 }
 0x92f   :  { %v1639_v8 = vadd.f32 %v1638_v7, %v1557_v46  ;;  %v1640_v42 = vpop.f32.mrb[39].mxu1 }
 0x930   :  { %v1641_v33 = vadd.f32 %v1640_v42, %v1557_v46 }
 0x931   :  { %v1645_v43 = vpack.c.bf16 %v1639_v8, %v1635_v4 }
 0x932   :  { %v1646_v9 = vpack.c.bf16 %v1641_v33, %v1637_v34 }
 0x934   :  { %1693 = vmatprep.subr.bf16.mxu0 %v1646_v9 }
 0x935   :  { %1694 = vmatpush1.bf16.msra.mxu0 %v1645_v43 }
 0x938   :  { %2093 = vmatmul.mubr.msk.bf16.vlgmr.msra.gmra.mrb[40].mxu0 %vm523_vm5, %v2340_v10 }
 0x939   :  { %1733 = vmatprep.mubr.bf16.mxu0 %v2410_v39 }
 0x940   :  { %2094 = vmatmul.mubr.msk.bf16.gmra.mrb[44].mxu0 %vm523_vm5, %v2341_v11 }
 0x941   :  { %1885 = vmatprep.mubr.bf16.mxu0 %v2410_v39 }
 0xa0b   :  { %v1725_v12 = vpop.f32.mrb[40].mxu0 }
 0xa0c   :  { %v1727_v14 = vpop.f32.mrb[41].mxu0  ;;  %v1726_v17 = vadd.f32 %v1725_v12, %v1658_v13 }
 0xa0d   :  { %v1729_v16 = vpop.f32.mrb[42].mxu0  ;;  %v1728_v20 = vadd.f32 %v1727_v14, %v1658_v13 }
 0xa0e   :  { %v1730_v18 = vadd.f32 %v1729_v16, %v1663_v15  ;;  %v1731_v19 = vpop.f32.mrb[43].mxu0 }
 0xa0f   :  { %v1732_v21 = vadd.f32 %v1731_v19, %v1663_v15 }
 0xa10   :  { %v1744_v22 = vpack.c.bf16 %v1730_v18, %v1726_v17 }
 0xa11   :  { %v1745_v23 = vpack.c.bf16 %v1732_v21, %v1728_v20 }
 0xa13   :  { %v1735_v38 = vpop.f32.mrb[44].mxu0  ;;  %1792 = vmatprep.subr.bf16.mxu1 %v1745_v23 }
 0xa14   :  { %v1737_v25 = vpop.f32.mrb[45].mxu0  ;;  %1793 = vmatpush1.bf16.msra.mxu1 %v1744_v22  ;;  %v1736_v30 = vadd.f32 %v1735_v38, %v1668_v24 }
 0xa15   :  { %v1739_v28 = vpop.f32.mrb[46].mxu0  ;;  %v1738_v41 = vadd.f32 %v1737_v25, %v1668_v24 }
 0xa16   :  { %v1740_v35 = vadd.f32 %v1739_v28, %v1673_v27  ;;  %v1741_v40 = vpop.f32.mrb[47].mxu0 }
 0xa17   :  { %v1742_v47 = vadd.f32 %v1741_v40, %v1673_v27 }
 0xa18   :  { %v1746_v48 = vpack.c.bf16 %v1740_v35, %v1736_v30 }
 0xa19   :  { %v1747_v49 = vpack.c.bf16 %v1742_v47, %v1738_v41 }
 0xa1b   :  { %1794 = vmatprep.subr.bf16.mxu1 %v1747_v49 }
 0xa1c   :  { %1795 = vmatpush1.bf16.msra.mxu1 %v1746_v48 }
 0xa1f   :  { %2105 = vmatmul.mubr.msk.bf16.vlgmr.msra.gmra.mrb[40].mxu1 %vm523_vm5, %v2342_v50 }
 0xa20   :  { %1834 = vmatprep.mubr.bf16.mxu1 %v2410_v39  ;;  %v1769_v39 = vpop.permute.xlu0 %1768 }
 0xa27   :  { %2106 = vmatmul.mubr.msk.bf16.gmra.mrb[44].mxu1 %vm523_vm5, %v2343_v51 }
 0xaf2   :  { %v1826_v52 = vpop.f32.mrb[40].mxu1 }
 0xaf3   :  { %v1828_v31 = vpop.f32.mrb[41].mxu1  ;;  %v1827_v54 = vadd.f32 %v1826_v52, %v1759_v53 }
 0xaf4   :  { %v1830_v37 = vpop.f32.mrb[42].mxu1  ;;  %v1829_v57 = vadd.f32 %v1828_v31, %v1759_v53 }
 0xaf5   :  { %v1831_v55 = vadd.f32 %v1830_v37, %v1764_v32  ;;  %v1832_v56 = vpop.f32.mrb[43].mxu1 }
 0xaf6   :  { %v1833_v58 = vadd.f32 %v1832_v56, %v1764_v32 }
 0xaf7   :  { %v1845_v59 = vpack.c.bf16 %v1831_v55, %v1827_v54 }
 0xaf8   :  { %v1846_v60 = vpack.c.bf16 %v1833_v58, %v1829_v57 }
 0xafa   :  { %v1836_v61 = vpop.f32.mrb[44].mxu1  ;;  %1853 = vmatprep.subr.bf16.mxu0 %v1846_v60 }
 0xafb   :  { %v1838_v44 = vpop.f32.mrb[45].mxu1  ;;  %1854 = vmatpush1.bf16.msra.mxu0 %v1845_v59  ;;  %v1837_v0 = vadd.f32 %v1836_v61, %v1769_v39 }
 0xafc   :  { %v1840_v63 = vpop.f32.mrb[46].mxu1  ;;  %v1839_v3 = vadd.f32 %v1838_v44, %v1769_v39 }
 0xafd   :  { %v1841_v1 = vadd.f32 %v1840_v63, %v1774_v62  ;;  %v1842_v2 = vpop.f32.mrb[47].mxu1 }
 0xafe   :  { %v1843_v5 = vadd.f32 %v1842_v2, %v1774_v62 }
 0xaff   :  { %v1847_v6 = vpack.c.bf16 %v1841_v1, %v1837_v0 }
 0xb00   :  { %v1848_v45 = vpack.c.bf16 %v1843_v5, %v1839_v3 }
 0xb02   :  { %1855 = vmatprep.subr.bf16.mxu0 %v1848_v45 }
 0xb03   :  { %1856 = vmatpush1.bf16.msra.mxu0 %v1847_v6 }
 0xb06   :  { %2107 = vmatmul.mubr.msk.bf16.vlgmr.msra.gmra.mrb[48].mxu0 %vm523_vm5, %v1849_v36 }
 0xb07   :  { %2371 = shalt.err (!%p2368_p4)
}
 0xb08   :  { %s2372_s8 = scalar_lea.hbm %s2921_s10, 512 }
 0xb09   :  { %p2373_p5 = scmp.ne.s32.totalorder %s2921_s10, %s2372_s8  ;;  %p2376_p6 = scmp.lt.u32.totalorder %s2372_s8, %s2921_s10 }
 0xb0b   :  { %p2378_p7 = pnand %p2376_p6, %p2373_p5 }
 0xb0d   :  { %2381 = shalt.err (!%p2378_p7)
}
 0xb0e   :  { %s2413_s24 = smov 128   ;;  %s2414_s9 = smov 8  }
 0xb0f   :  { %1921 = dma.vmem_to_hbm [thread:$0]  %s1916_s18, 512, %s2921_s10, [#allocation3], %s2413_s24, %s2413_s24, %s2414_s9  }
 0xb10   :  { %s2415_s26 = smov [#allocation4]  }
 0xb11   :  { %s1927_s27 = sshll.u32 %s2415_s26, 4  ;;  %s1928_s27 = int_to_ptr.vmem [resolvable:$true] %s1927_s27 }
 0xb12   :  { %s2382_s28 = scalar_lea.vmem %s1928_s27, 512  ;;  %p2387_p9 = scmp.lt.s32.totalorder %s1928_s27, %s1928_s27 }
 0xb13   :  { %p2383_p8 = scmp.ne.s32.totalorder %s1928_s27, %s2382_s28  ;;  %p2388_p10 = scmp.lt.s32.totalorder %s2382_s28, %s2382_s28 }
 0xb15   :  { %p2389_p11 = por %p2388_p10, %p2387_p9 }
 0xb17   :  { %p2390_p12 = pnand %p2389_p11, %p2383_p8 }
 0xbd9   :  { %v1887_v26 = vpop.f32.mrb[48].mxu0 }
 0xbda   :  { %v1889_v29 = vpop.f32.mrb[49].mxu0 }
 0xbdb   :  { %v2112_v36 = vpack.c.bf16 %v1889_v29, %v1887_v26  ;;  %v1891_v46 = vpop.f32.mrb[50].mxu0 }
 0xbdc   :  { %v1893_v7 = vpop.f32.mrb[51].mxu0 }
 0xbdd   :  { %1908 = vst [vmem:[#allocation4 + $0x10] sm:$0xff] %v2112_v36  ;;  %v2113_v4 = vpack.c.bf16 %v1893_v7, %v1891_v46 }
 0xbdf   :  { %1909 = vst [vmem:[#allocation4 + $0x18] sm:$0xff] %v2113_v4 }
 0xbe0   :  { %2393 = shalt.err (!%p2390_p12)
}
 0xbe1   :  { %s2394_s29 = scalar_lea.hbm %s2922_s11, 512 }
 0xbe2   :  { %p2395_p13 = scmp.ne.s32.totalorder %s2922_s11, %s2394_s29  ;;  %p2398_p0 = scmp.lt.u32.totalorder %s2394_s29, %s2922_s11 }
 0xbe4   :  { %p2400_p1 = pnand %p2398_p0, %p2395_p13 }
 0xbe6   :  { %2403 = shalt.err (!%p2400_p1)
}
 0xbe7   :  { %1933 = dma.vmem_to_hbm [thread:$0]  %s1928_s27, 512, %s2922_s11, [#allocation5], %s2413_s24, %s2413_s24, %s2414_s9  }
 0xbe8   :  { %2404 = dma.done.wait [#allocation3], 512  }
 0xbe9   :  { %2405 = vsyncadd [#allocation3], 4294966784 }
 0xbea   :  { %2406 = dma.done.wait [#allocation5], 512  }
 0xbeb   :  { %2407 = vsyncadd [#allocation5], 4294966784 }
 0xbec   :  { %1940 = vsyncpa [#allocation3], 1 }
 0xbed   :  { %1941 = vsyncpa [#allocation5], 1 }

</bundles_post_ra>
